<compile_context>
chip_gen: v5e
topology: v5e:2x2
jax: 0.10.0
libtpu: 0.0.40
codegen_flags: <defaults>
</compile_context>

<pallas_src>
import jax
import jax.numpy as jnp
from jax import lax
from jax.experimental import pallas as pl
from jax.experimental.pallas import tpu as pltpu

# ----- small synthetic CLIP text-transformer hyper-params -----
B = 2       # batch
S = 8       # context length (sequence)
D = 32      # transformer width
H = 4       # attention heads
DH = D // H
L = 2       # transformer layers
E = 16      # text_projection output dim
N = B * S   # flattened rows
EPS = 1e-5
NEG_INF = -1e30   # large finite negative (safer than -inf)


def _layernorm(x, w, b):
    # w, b: (1, D) rows (broadcast over sublanes)
    mu = jnp.mean(x, axis=-1, keepdims=True)
    var = jnp.mean((x - mu) ** 2, axis=-1, keepdims=True)
    return (x - mu) * lax.rsqrt(var + EPS) * w + b


def _softmax_rows(s):
    m = jnp.max(s, axis=-1, keepdims=True)
    e = jnp.exp(s - m)
    den = jnp.sum(e, axis=-1, keepdims=True)
    r = pl.reciprocal(den, approx=True)      # EUP slot
    r = r * (2.0 - den * r)                  # one Newton step -> ~exact
    return e * r


def text_encoder_kernel(eot_ref,        # SMEM scalar-prefetch: (B,) int32 EOT positions
                        xp_ref,         # (2, N, D): [0]=prompts flattened, [1]=tiled pos-emb
                        mask_ref,       # (N, N) block-diag causal mask (0 / -1e30)
                        vec_ref,        # (6L+2, D): per layer [ln1_w,ln1_b,ln2_w,ln2_b,bo,b2], then lnf_w,lnf_b
                        wide_ref,       # (2L, 4D): per layer [b1 ; bqkv zero-padded to 4D]
                        wqkv_ref,       # (L, D, 3D)
                        wo_ref,         # (L, D, D)
                        w1_ref,         # (L, D, 4D)
                        w2_ref,         # (L, 4D, D)
                        tproj_ref,      # (D, E)
                        out_ref,        # (B, E)
                        xf_ref):        # VMEM scratch (N, D)
    x = xp_ref[0] + xp_ref[1]           # prompts + positional embedding
    mask = mask_ref[...]
    scale = 1.0 / (DH ** 0.5)

    for l in range(L):                   # L=2, unrolled, static indexing
        r0 = 6 * l

        # ---- multi-head self attention: x = x + attn(ln_1(x)) ----
        h = _layernorm(x, vec_ref[r0:r0 + 1, :], vec_ref[r0 + 1:r0 + 2, :])
        # single fused qkv projection: (N, D) @ (D, 3D) -> (N, 3D)
        qkv = (jnp.dot(h, wqkv_ref[l], preferred_element_type=jnp.float32)
               + wide_ref[2 * l + 1:2 * l + 2, 0:3 * D])

        ctx_cols = []
        for hd in range(H):              # static lane slices, one 128-lane tile
            q = qkv[:, hd * DH:(hd + 1) * DH] * scale              # (N, DH)
            k = qkv[:, D + hd * DH:D + (hd + 1) * DH]              # (N, DH)
            v = qkv[:, 2 * D + hd * DH:2 * D + (hd + 1) * DH]      # (N, DH)
            s = jnp.einsum('qd,kd->qk', q, k,
                           preferred_element_type=jnp.float32) + mask
            p = _softmax_rows(s)
            ctx_cols.append(jnp.dot(p, v, preferred_element_type=jnp.float32))
        ctx = jnp.concatenate(ctx_cols, axis=-1)                   # (N, D)
        x = (x + jnp.dot(ctx, wo_ref[l], preferred_element_type=jnp.float32)
             + vec_ref[r0 + 4:r0 + 5, :])

        # ---- MLP block: x = x + mlp(ln_2(x)), QuickGELU ----
        h = _layernorm(x, vec_ref[r0 + 2:r0 + 3, :], vec_ref[r0 + 3:r0 + 4, :])
        h1 = (jnp.dot(h, w1_ref[l], preferred_element_type=jnp.float32)
              + wide_ref[2 * l:2 * l + 1, :])
        h1 = h1 * jax.nn.sigmoid(1.702 * h1)
        x = (x + jnp.dot(h1, w2_ref[l], preferred_element_type=jnp.float32)
             + vec_ref[r0 + 5:r0 + 6, :])

    # ln_final -> VMEM scratch so the EOT rows can be read with dynamic slices
    xf_ref[...] = _layernorm(x, vec_ref[6 * L:6 * L + 1, :],
                             vec_ref[6 * L + 1:6 * L + 2, :])

    # EOT-token gather (dynamic sublane slice per batch element) + projection.
    # eot comes from argmax so it is always < S (no OOB).
    rows = [xf_ref[pl.ds(b * S + eot_ref[b], 1), :] for b in range(B)]
    pooled = jnp.concatenate(rows, axis=0)                         # (B, D)
    out_ref[...] = jnp.dot(pooled, tproj_ref[...],
                           preferred_element_type=jnp.float32)


def text_encoder_pallas(prompts, tokenized_prompts, params):
    eot_idx = jnp.argmax(tokenized_prompts, axis=-1).astype(jnp.int32)   # (B,)

    # ---- host-side layout plumbing (pure reshapes / stacking of constants) ----
    x0 = prompts.reshape(N, D)
    pos_tiled = jnp.tile(params["pos"], (B, 1))          # (N, D)
    xp = jnp.stack([x0, pos_tiled], axis=0)              # (2, N, D)

    # block-diagonal causal mask over the B*S flattened rows
    row = jnp.arange(N)[:, None]
    col = jnp.arange(N)[None, :]
    keep = ((row // S) == (col // S)) & ((col % S) <= (row % S))
    mask = jnp.where(keep, 0.0, NEG_INF).astype(jnp.float32)              # (N, N)

    # D-wide per-layer vectors packed into one slab:
    # rows per layer: [ln1_w, ln1_b, ln2_w, ln2_b, bo, b2]; then lnf_w, lnf_b.
    vec_rows = []
    for l in range(L):
        vec_rows += [params["ln1_w"][l], params["ln1_b"][l],
                     params["ln2_w"][l], params["ln2_b"][l],
                     params["bo"][l],    params["b2"][l]]
    vec_rows += [params["lnf_w"][0], params["lnf_b"][0]]
    vec_slab = jnp.stack(vec_rows, axis=0)                                # (6L+2, D)

    # 4D-wide rows: per layer [b1 ; bqkv zero-padded to 4D]
    bqkv_pad = jnp.pad(params["bqkv"], ((0, 0), (0, D)))                  # (L, 4D)
    wide_slab = jnp.stack([params["b1"], bqkv_pad], axis=1).reshape(2 * L, 4 * D)

    def c0(*shape):
        nd = len(shape)
        return pl.BlockSpec(shape, lambda i, eot, _nd=nd: (0,) * _nd)

    grid_spec = pltpu.PrefetchScalarGridSpec(
        num_scalar_prefetch=1,
        grid=(1,),                                    # single step: whole batch at once
        in_specs=[
            c0(2, N, D),                              # xp (prompts + tiled pos)
            c0(N, N),                                 # mask
            c0(6 * L + 2, D),                         # vec_slab (LN params, bo, b2)
            c0(2 * L, 4 * D),                         # wide_slab (b1, qkv bias)
            c0(L, D, 3 * D),                          # wqkv
            c0(L, D, D),                              # wo
            c0(L, D, 4 * D),                          # w1
            c0(L, 4 * D, D),                          # w2
            c0(D, E),                                 # text_projection
        ],
        out_specs=pl.BlockSpec((B, E), lambda i, eot: (0, 0)),
        scratch_shapes=[pltpu.VMEM((N, D), jnp.float32)],
    )

    out = pl.pallas_call(
        text_encoder_kernel,
        out_shape=jax.ShapeDtypeStruct((B, E), jnp.float32),
        grid_spec=grid_spec,
        compiler_params=pltpu.CompilerParams(dimension_semantics=("arbitrary",)),
    )(
        eot_idx,
        xp, mask, vec_slab, wide_slab,
        params["wqkv"], params["wo"], params["w1"], params["w2"],
        params["tproj"],
    )
    return out                                         # (B, E)


# ---------------- pure-JAX reference for validation ----------------
def text_encoder_ref(prompts, tokenized_prompts, params):
    def ln(x, w, b):
        mu = x.mean(-1, keepdims=True)
        var = ((x - mu) ** 2).mean(-1, keepdims=True)
        return (x - mu) / jnp.sqrt(var + EPS) * w + b

    x = prompts + params["pos"]                        # (B, S, D)
    row = jnp.arange(S)[:, None]
    col = jnp.arange(S)[None, :]
    mask = jnp.where(col <= row, 0.0, -jnp.inf)
    scale = 1.0 / (DH ** 0.5)

    for l in range(L):
        h = ln(x, params["ln1_w"][l], params["ln1_b"][l])
        qkv = h @ params["wqkv"][l] + params["bqkv"][l]
        q, k, v = jnp.split(qkv, 3, axis=-1)
        q = q.reshape(B, S, H, DH).transpose(0, 2, 1, 3)
        k = k.reshape(B, S, H, DH).transpose(0, 2, 1, 3)
        v = v.reshape(B, S, H, DH).transpose(0, 2, 1, 3)
        s = jnp.einsum("bhqd,bhkd->bhqk", q, k) * scale + mask
        p = jax.nn.softmax(s, axis=-1)
        a = jnp.einsum("bhqk,bhkd->bhqd", p, v).transpose(0, 2, 1, 3).reshape(B, S, D)
        x = x + (a @ params["wo"][l] + params["bo"][l])

        h = ln(x, params["ln2_w"][l], params["ln2_b"][l])
        h1 = h @ params["w1"][l] + params["b1"][l]
        h1 = h1 * jax.nn.sigmoid(1.702 * h1)
        x = x + (h1 @ params["w2"][l] + params["b2"][l])

    x = ln(x, params["lnf_w"][0], params["lnf_b"][0])
    eot = jnp.argmax(tokenized_prompts, axis=-1)
    pooled = x[jnp.arange(B), eot]                     # (B, D)
    return pooled @ params["tproj"]                    # (B, E)


def make_params(key):
    ks = jax.random.split(key, 10)
    std = 0.02
    return {
        "pos":   std * jax.random.normal(ks[0], (S, D), jnp.float32),
        "ln1_w": jnp.ones((L, D), jnp.float32),
        "ln1_b": jnp.zeros((L, D), jnp.float32),
        "wqkv":  std * jax.random.normal(ks[1], (L, D, 3 * D), jnp.float32),
        "bqkv":  jnp.zeros((L, 3 * D), jnp.float32),
        "wo":    std * jax.random.normal(ks[2], (L, D, D), jnp.float32),
        "bo":    jnp.zeros((L, D), jnp.float32),
        "ln2_w": jnp.ones((L, D), jnp.float32),
        "ln2_b": jnp.zeros((L, D), jnp.float32),
        "w1":    std * jax.random.normal(ks[3], (L, D, 4 * D), jnp.float32),
        "b1":    jnp.zeros((L, 4 * D), jnp.float32),
        "w2":    std * jax.random.normal(ks[4], (L, 4 * D, D), jnp.float32),
        "b2":    jnp.zeros((L, D), jnp.float32),
        "lnf_w": jnp.ones((1, D), jnp.float32),
        "lnf_b": jnp.zeros((1, D), jnp.float32),
        "tproj": std * jax.random.normal(ks[5], (D, E), jnp.float32),
    }


if __name__ == "__main__":
    key = jax.random.PRNGKey(0)
    k_p, k_t, k_w = jax.random.split(key, 3)

    params = make_params(k_w)
    prompts = jax.random.normal(k_p, (B, S, D), jnp.float32)

    # synthetic tokenized prompts: random small ids with an EOT (max id) token
    # placed at a different position per batch element.
    tok = jax.random.randint(k_t, (B, S), 1, 100, dtype=jnp.int32)
    tok = tok.at[0, 5].set(49407).at[1, 3].set(49407)

    out = text_encoder_pallas(prompts, tok, params)
    out = jax.block_until_ready(out)

    ref = text_encoder_ref(prompts, tok, params)
    assert out.shape == (B, E)
    assert jnp.allclose(out, ref, atol=2e-4, rtol=2e-4), (
        f"max abs err = {jnp.max(jnp.abs(out - ref))}")

    print("KERNEL_OK")
</pallas_src>

<mosaic_0001>
module attributes {stable_mosaic.version = 11 : i64} {
  func.func @text_encoder_kernel(%arg0: i32, %arg1: memref<2xi32, #tpu.memory_space<smem>>, %arg2: memref<2x16x32xf32, #tpu.memory_space<vmem>>, %arg3: memref<16x16xf32, #tpu.memory_space<vmem>>, %arg4: memref<14x32xf32, #tpu.memory_space<vmem>>, %arg5: memref<4x128xf32, #tpu.memory_space<vmem>>, %arg6: memref<2x32x96xf32, #tpu.memory_space<vmem>>, %arg7: memref<2x32x32xf32, #tpu.memory_space<vmem>>, %arg8: memref<2x32x128xf32, #tpu.memory_space<vmem>>, %arg9: memref<2x128x32xf32, #tpu.memory_space<vmem>>, %arg10: memref<32x16xf32, #tpu.memory_space<vmem>>, %arg11: memref<2x16xf32, #tpu.memory_space<vmem>>, %arg12: memref<16x32xf32, #tpu.memory_space<vmem>>) attributes {dimension_semantics = [#tpu.dimension_semantics<arbitrary>], iteration_bounds = array<i64: 1>, scalar_prefetch = 1 : i64, scratch_operands = 1 : i64, tpu.core_type = #tpu.core_type<tc>, window_params = [{pipeline_mode = #tpu.pipeline_mode<synchronous>, transform_indices = @transform_0, window_bounds = array<i64: 2, 16, 32>}, {pipeline_mode = #tpu.pipeline_mode<synchronous>, transform_indices = @transform_1, window_bounds = array<i64: 16, 16>}, {pipeline_mode = #tpu.pipeline_mode<synchronous>, transform_indices = @transform_2, window_bounds = array<i64: 14, 32>}, {pipeline_mode = #tpu.pipeline_mode<synchronous>, transform_indices = @transform_3, window_bounds = array<i64: 4, 128>}, {pipeline_mode = #tpu.pipeline_mode<synchronous>, transform_indices = @transform_4, window_bounds = array<i64: 2, 32, 96>}, {pipeline_mode = #tpu.pipeline_mode<synchronous>, transform_indices = @transform_5, window_bounds = array<i64: 2, 32, 32>}, {pipeline_mode = #tpu.pipeline_mode<synchronous>, transform_indices = @transform_6, window_bounds = array<i64: 2, 32, 128>}, {pipeline_mode = #tpu.pipeline_mode<synchronous>, transform_indices = @transform_7, window_bounds = array<i64: 2, 128, 32>}, {pipeline_mode = #tpu.pipeline_mode<synchronous>, transform_indices = @transform_8, window_bounds = array<i64: 32, 16>}, {pipeline_mode = #tpu.pipeline_mode<synchronous>, transform_indices = @transform_9, window_bounds = array<i64: 2, 16>}]} {
    %c0 = arith.constant 0 : index
    %c0_0 = arith.constant 0 : index
    %c0_1 = arith.constant 0 : index
    %0 = vector.load %arg2[%c0, %c0_0, %c0_1] : memref<2x16x32xf32, #tpu.memory_space<vmem>>, vector<1x16x32xf32>
    %1 = vector.shape_cast %0 : vector<1x16x32xf32> to vector<16x32xf32>
    %c1 = arith.constant 1 : index
    %c0_2 = arith.constant 0 : index
    %c0_3 = arith.constant 0 : index
    %2 = vector.load %arg2[%c1, %c0_2, %c0_3] : memref<2x16x32xf32, #tpu.memory_space<vmem>>, vector<1x16x32xf32>
    %3 = vector.shape_cast %2 : vector<1x16x32xf32> to vector<16x32xf32>
    %4 = arith.addf %1, %3 : vector<16x32xf32>
    %c0_4 = arith.constant 0 : index
    %c0_5 = arith.constant 0 : index
    %5 = vector.load %arg3[%c0_4, %c0_5] : memref<16x16xf32, #tpu.memory_space<vmem>>, vector<16x16xf32>
    %c0_6 = arith.constant 0 : index
    %c0_7 = arith.constant 0 : index
    %6 = vector.load %arg4[%c0_6, %c0_7] : memref<14x32xf32, #tpu.memory_space<vmem>>, vector<1x32xf32>
    %c1_8 = arith.constant 1 : index
    %c0_9 = arith.constant 0 : index
    %7 = vector.load %arg4[%c1_8, %c0_9] : memref<14x32xf32, #tpu.memory_space<vmem>>, vector<1x32xf32>
    %cst = arith.constant dense<0.000000e+00> : vector<16xf32>
    %8 = vector.multi_reduction <add>, %4, %cst [1] : vector<16x32xf32> to vector<16xf32>
    %9 = vector.shape_cast %8 : vector<16xf32> to vector<16x1xf32>
    %cst_10 = arith.constant 3.200000e+01 : f32
    %10 = vector.broadcast %cst_10 : f32 to vector<16x1xf32>
    %11 = arith.divf %9, %10 : vector<16x1xf32>
    %12 = vector.broadcast %11 : vector<16x1xf32> to vector<16x32xf32>
    %13 = arith.subf %4, %12 : vector<16x32xf32>
    %14 = arith.mulf %13, %13 : vector<16x32xf32>
    %cst_11 = arith.constant dense<0.000000e+00> : vector<16xf32>
    %15 = vector.multi_reduction <add>, %14, %cst_11 [1] : vector<16x32xf32> to vector<16xf32>
    %16 = vector.shape_cast %15 : vector<16xf32> to vector<16x1xf32>
    %cst_12 = arith.constant 3.200000e+01 : f32
    %17 = vector.broadcast %cst_12 : f32 to vector<16x1xf32>
    %18 = arith.divf %16, %17 : vector<16x1xf32>
    %19 = vector.broadcast %11 : vector<16x1xf32> to vector<16x32xf32>
    %20 = arith.subf %4, %19 : vector<16x32xf32>
    %cst_13 = arith.constant 9.99999974E-6 : f32
    %21 = vector.broadcast %cst_13 : f32 to vector<16x1xf32>
    %22 = arith.addf %18, %21 : vector<16x1xf32>
    %23 = math.rsqrt %22 : vector<16x1xf32>
    %24 = vector.broadcast %23 : vector<16x1xf32> to vector<16x32xf32>
    %25 = arith.mulf %20, %24 : vector<16x32xf32>
    %26 = vector.broadcast %6 : vector<1x32xf32> to vector<16x32xf32>
    %27 = arith.mulf %25, %26 : vector<16x32xf32>
    %28 = vector.broadcast %7 : vector<1x32xf32> to vector<16x32xf32>
    %29 = arith.addf %27, %28 : vector<16x32xf32>
    %c0_14 = arith.constant 0 : index
    %c0_15 = arith.constant 0 : index
    %c0_16 = arith.constant 0 : index
    %30 = vector.load %arg6[%c0_14, %c0_15, %c0_16] : memref<2x32x96xf32, #tpu.memory_space<vmem>>, vector<1x32x96xf32>
    %31 = vector.shape_cast %30 : vector<1x32x96xf32> to vector<32x96xf32>
    %cst_17 = arith.constant dense<0.000000e+00> : vector<16x96xf32>
    %32 = tpu.matmul %29, %31, %cst_17 {dimension_numbers = #tpu.dot_dimension_numbers<[1], [0], [0], [1], [0, 0, 1, 1], [], []>} : vector<16x32xf32>, vector<32x96xf32>, vector<16x96xf32> -> vector<16x96xf32>
    %c1_18 = arith.constant 1 : index
    %c0_19 = arith.constant 0 : index
    %33 = vector.load %arg5[%c1_18, %c0_19] : memref<4x128xf32, #tpu.memory_space<vmem>>, vector<1x96xf32>
    %34 = vector.broadcast %33 : vector<1x96xf32> to vector<16x96xf32>
    %35 = arith.addf %32, %34 : vector<16x96xf32>
    %36 = vector.extract_strided_slice %35 {offsets = [0, 0], sizes = [16, 8], strides = [1, 1]} : vector<16x96xf32> to vector<16x8xf32>
    %cst_20 = arith.constant 0.353553385 : f32
    %37 = vector.broadcast %cst_20 : f32 to vector<16x8xf32>
    %38 = arith.mulf %36, %37 : vector<16x8xf32>
    %39 = vector.extract_strided_slice %35 {offsets = [0, 32], sizes = [16, 8], strides = [1, 1]} : vector<16x96xf32> to vector<16x8xf32>
    %40 = vector.extract_strided_slice %35 {offsets = [0, 64], sizes = [16, 8], strides = [1, 1]} : vector<16x96xf32> to vector<16x8xf32>
    "tpu.trace_start"() <{level = 10 : i32, message = "qd,kd->qk"}> : () -> ()
    %cst_21 = arith.constant dense<0.000000e+00> : vector<16x16xf32>
    %41 = tpu.matmul %38, %39, %cst_21 {dimension_numbers = #tpu.dot_dimension_numbers<[1], [1], [0], [0], [0, 0, 1, 0], [], []>} : vector<16x8xf32>, vector<16x8xf32>, vector<16x16xf32> -> vector<16x16xf32>
    "tpu.trace_stop"() : () -> ()
    %42 = arith.addf %41, %5 : vector<16x16xf32>
    %cst_22 = arith.constant dense<0xFF800000> : vector<16xf32>
    %43 = vector.multi_reduction <maximumf>, %42, %cst_22 [1] : vector<16x16xf32> to vector<16xf32>
    %44 = vector.shape_cast %43 : vector<16xf32> to vector<16x1xf32>
    %45 = vector.broadcast %44 : vector<16x1xf32> to vector<16x16xf32>
    %46 = arith.subf %42, %45 : vector<16x16xf32>
    %47 = math.exp %46 : vector<16x16xf32>
    %cst_23 = arith.constant dense<0.000000e+00> : vector<16xf32>
    %48 = vector.multi_reduction <add>, %47, %cst_23 [1] : vector<16x16xf32> to vector<16xf32>
    %49 = vector.shape_cast %48 : vector<16xf32> to vector<16x1xf32>
    %50 = tpu.reciprocal %49 {approx = true} : vector<16x1xf32> -> vector<16x1xf32>
    %51 = arith.mulf %49, %50 : vector<16x1xf32>
    %cst_24 = arith.constant 2.000000e+00 : f32
    %52 = vector.broadcast %cst_24 : f32 to vector<16x1xf32>
    %53 = arith.subf %52, %51 : vector<16x1xf32>
    %54 = arith.mulf %50, %53 : vector<16x1xf32>
    %55 = vector.broadcast %54 : vector<16x1xf32> to vector<16x16xf32>
    %56 = arith.mulf %47, %55 : vector<16x16xf32>
    %cst_25 = arith.constant dense<0.000000e+00> : vector<16x8xf32>
    %57 = tpu.matmul %56, %40, %cst_25 {dimension_numbers = #tpu.dot_dimension_numbers<[1], [0], [0], [1], [0, 0, 1, 1], [], []>} : vector<16x16xf32>, vector<16x8xf32>, vector<16x8xf32> -> vector<16x8xf32>
    %58 = vector.extract_strided_slice %35 {offsets = [0, 8], sizes = [16, 8], strides = [1, 1]} : vector<16x96xf32> to vector<16x8xf32>
    %cst_26 = arith.constant 0.353553385 : f32
    %59 = vector.broadcast %cst_26 : f32 to vector<16x8xf32>
    %60 = arith.mulf %58, %59 : vector<16x8xf32>
    %61 = vector.extract_strided_slice %35 {offsets = [0, 40], sizes = [16, 8], strides = [1, 1]} : vector<16x96xf32> to vector<16x8xf32>
    %62 = vector.extract_strided_slice %35 {offsets = [0, 72], sizes = [16, 8], strides = [1, 1]} : vector<16x96xf32> to vector<16x8xf32>
    "tpu.trace_start"() <{level = 10 : i32, message = "qd,kd->qk"}> : () -> ()
    %cst_27 = arith.constant dense<0.000000e+00> : vector<16x16xf32>
    %63 = tpu.matmul %60, %61, %cst_27 {dimension_numbers = #tpu.dot_dimension_numbers<[1], [1], [0], [0], [0, 0, 1, 0], [], []>} : vector<16x8xf32>, vector<16x8xf32>, vector<16x16xf32> -> vector<16x16xf32>
    "tpu.trace_stop"() : () -> ()
    %64 = arith.addf %63, %5 : vector<16x16xf32>
    %cst_28 = arith.constant dense<0xFF800000> : vector<16xf32>
    %65 = vector.multi_reduction <maximumf>, %64, %cst_28 [1] : vector<16x16xf32> to vector<16xf32>
    %66 = vector.shape_cast %65 : vector<16xf32> to vector<16x1xf32>
    %67 = vector.broadcast %66 : vector<16x1xf32> to vector<16x16xf32>
    %68 = arith.subf %64, %67 : vector<16x16xf32>
    %69 = math.exp %68 : vector<16x16xf32>
    %cst_29 = arith.constant dense<0.000000e+00> : vector<16xf32>
    %70 = vector.multi_reduction <add>, %69, %cst_29 [1] : vector<16x16xf32> to vector<16xf32>
    %71 = vector.shape_cast %70 : vector<16xf32> to vector<16x1xf32>
    %72 = tpu.reciprocal %71 {approx = true} : vector<16x1xf32> -> vector<16x1xf32>
    %73 = arith.mulf %71, %72 : vector<16x1xf32>
    %cst_30 = arith.constant 2.000000e+00 : f32
    %74 = vector.broadcast %cst_30 : f32 to vector<16x1xf32>
    %75 = arith.subf %74, %73 : vector<16x1xf32>
    %76 = arith.mulf %72, %75 : vector<16x1xf32>
    %77 = vector.broadcast %76 : vector<16x1xf32> to vector<16x16xf32>
    %78 = arith.mulf %69, %77 : vector<16x16xf32>
    %cst_31 = arith.constant dense<0.000000e+00> : vector<16x8xf32>
    %79 = tpu.matmul %78, %62, %cst_31 {dimension_numbers = #tpu.dot_dimension_numbers<[1], [0], [0], [1], [0, 0, 1, 1], [], []>} : vector<16x16xf32>, vector<16x8xf32>, vector<16x8xf32> -> vector<16x8xf32>
    %80 = vector.extract_strided_slice %35 {offsets = [0, 16], sizes = [16, 8], strides = [1, 1]} : vector<16x96xf32> to vector<16x8xf32>
    %cst_32 = arith.constant 0.353553385 : f32
    %81 = vector.broadcast %cst_32 : f32 to vector<16x8xf32>
    %82 = arith.mulf %80, %81 : vector<16x8xf32>
    %83 = vector.extract_strided_slice %35 {offsets = [0, 48], sizes = [16, 8], strides = [1, 1]} : vector<16x96xf32> to vector<16x8xf32>
    %84 = vector.extract_strided_slice %35 {offsets = [0, 80], sizes = [16, 8], strides = [1, 1]} : vector<16x96xf32> to vector<16x8xf32>
    "tpu.trace_start"() <{level = 10 : i32, message = "qd,kd->qk"}> : () -> ()
    %cst_33 = arith.constant dense<0.000000e+00> : vector<16x16xf32>
    %85 = tpu.matmul %82, %83, %cst_33 {dimension_numbers = #tpu.dot_dimension_numbers<[1], [1], [0], [0], [0, 0, 1, 0], [], []>} : vector<16x8xf32>, vector<16x8xf32>, vector<16x16xf32> -> vector<16x16xf32>
    "tpu.trace_stop"() : () -> ()
    %86 = arith.addf %85, %5 : vector<16x16xf32>
    %cst_34 = arith.constant dense<0xFF800000> : vector<16xf32>
    %87 = vector.multi_reduction <maximumf>, %86, %cst_34 [1] : vector<16x16xf32> to vector<16xf32>
    %88 = vector.shape_cast %87 : vector<16xf32> to vector<16x1xf32>
    %89 = vector.broadcast %88 : vector<16x1xf32> to vector<16x16xf32>
    %90 = arith.subf %86, %89 : vector<16x16xf32>
    %91 = math.exp %90 : vector<16x16xf32>
    %cst_35 = arith.constant dense<0.000000e+00> : vector<16xf32>
    %92 = vector.multi_reduction <add>, %91, %cst_35 [1] : vector<16x16xf32> to vector<16xf32>
    %93 = vector.shape_cast %92 : vector<16xf32> to vector<16x1xf32>
    %94 = tpu.reciprocal %93 {approx = true} : vector<16x1xf32> -> vector<16x1xf32>
    %95 = arith.mulf %93, %94 : vector<16x1xf32>
    %cst_36 = arith.constant 2.000000e+00 : f32
    %96 = vector.broadcast %cst_36 : f32 to vector<16x1xf32>
    %97 = arith.subf %96, %95 : vector<16x1xf32>
    %98 = arith.mulf %94, %97 : vector<16x1xf32>
    %99 = vector.broadcast %98 : vector<16x1xf32> to vector<16x16xf32>
    %100 = arith.mulf %91, %99 : vector<16x16xf32>
    %cst_37 = arith.constant dense<0.000000e+00> : vector<16x8xf32>
    %101 = tpu.matmul %100, %84, %cst_37 {dimension_numbers = #tpu.dot_dimension_numbers<[1], [0], [0], [1], [0, 0, 1, 1], [], []>} : vector<16x16xf32>, vector<16x8xf32>, vector<16x8xf32> -> vector<16x8xf32>
    %102 = vector.extract_strided_slice %35 {offsets = [0, 24], sizes = [16, 8], strides = [1, 1]} : vector<16x96xf32> to vector<16x8xf32>
    %cst_38 = arith.constant 0.353553385 : f32
    %103 = vector.broadcast %cst_38 : f32 to vector<16x8xf32>
    %104 = arith.mulf %102, %103 : vector<16x8xf32>
    %105 = vector.extract_strided_slice %35 {offsets = [0, 56], sizes = [16, 8], strides = [1, 1]} : vector<16x96xf32> to vector<16x8xf32>
    %106 = vector.extract_strided_slice %35 {offsets = [0, 88], sizes = [16, 8], strides = [1, 1]} : vector<16x96xf32> to vector<16x8xf32>
    "tpu.trace_start"() <{level = 10 : i32, message = "qd,kd->qk"}> : () -> ()
    %cst_39 = arith.constant dense<0.000000e+00> : vector<16x16xf32>
    %107 = tpu.matmul %104, %105, %cst_39 {dimension_numbers = #tpu.dot_dimension_numbers<[1], [1], [0], [0], [0, 0, 1, 0], [], []>} : vector<16x8xf32>, vector<16x8xf32>, vector<16x16xf32> -> vector<16x16xf32>
    "tpu.trace_stop"() : () -> ()
    %108 = arith.addf %107, %5 : vector<16x16xf32>
    %cst_40 = arith.constant dense<0xFF800000> : vector<16xf32>
    %109 = vector.multi_reduction <maximumf>, %108, %cst_40 [1] : vector<16x16xf32> to vector<16xf32>
    %110 = vector.shape_cast %109 : vector<16xf32> to vector<16x1xf32>
    %111 = vector.broadcast %110 : vector<16x1xf32> to vector<16x16xf32>
    %112 = arith.subf %108, %111 : vector<16x16xf32>
    %113 = math.exp %112 : vector<16x16xf32>
    %cst_41 = arith.constant dense<0.000000e+00> : vector<16xf32>
    %114 = vector.multi_reduction <add>, %113, %cst_41 [1] : vector<16x16xf32> to vector<16xf32>
    %115 = vector.shape_cast %114 : vector<16xf32> to vector<16x1xf32>
    %116 = tpu.reciprocal %115 {approx = true} : vector<16x1xf32> -> vector<16x1xf32>
    %117 = arith.mulf %115, %116 : vector<16x1xf32>
    %cst_42 = arith.constant 2.000000e+00 : f32
    %118 = vector.broadcast %cst_42 : f32 to vector<16x1xf32>
    %119 = arith.subf %118, %117 : vector<16x1xf32>
    %120 = arith.mulf %116, %119 : vector<16x1xf32>
    %121 = vector.broadcast %120 : vector<16x1xf32> to vector<16x16xf32>
    %122 = arith.mulf %113, %121 : vector<16x16xf32>
    %cst_43 = arith.constant dense<0.000000e+00> : vector<16x8xf32>
    %123 = tpu.matmul %122, %106, %cst_43 {dimension_numbers = #tpu.dot_dimension_numbers<[1], [0], [0], [1], [0, 0, 1, 1], [], []>} : vector<16x16xf32>, vector<16x8xf32>, vector<16x8xf32> -> vector<16x8xf32>
    %124 = tpu.concatenate %57, %79, %101, %123 in 1 : vector<16x8xf32>, vector<16x8xf32>, vector<16x8xf32>, vector<16x8xf32> -> vector<16x32xf32>
    %c0_44 = arith.constant 0 : index
    %c0_45 = arith.constant 0 : index
    %c0_46 = arith.constant 0 : index
    %125 = vector.load %arg7[%c0_44, %c0_45, %c0_46] : memref<2x32x32xf32, #tpu.memory_space<vmem>>, vector<1x32x32xf32>
    %126 = vector.shape_cast %125 : vector<1x32x32xf32> to vector<32x32xf32>
    %cst_47 = arith.constant dense<0.000000e+00> : vector<16x32xf32>
    %127 = tpu.matmul %124, %126, %cst_47 {dimension_numbers = #tpu.dot_dimension_numbers<[1], [0], [0], [1], [0, 0, 1, 1], [], []>} : vector<16x32xf32>, vector<32x32xf32>, vector<16x32xf32> -> vector<16x32xf32>
    %128 = arith.addf %4, %127 : vector<16x32xf32>
    %c4 = arith.constant 4 : index
    %c0_48 = arith.constant 0 : index
    %129 = vector.load %arg4[%c4, %c0_48] : memref<14x32xf32, #tpu.memory_space<vmem>>, vector<1x32xf32>
    %130 = vector.broadcast %129 : vector<1x32xf32> to vector<16x32xf32>
    %131 = arith.addf %128, %130 : vector<16x32xf32>
    %c2 = arith.constant 2 : index
    %c0_49 = arith.constant 0 : index
    %132 = vector.load %arg4[%c2, %c0_49] : memref<14x32xf32, #tpu.memory_space<vmem>>, vector<1x32xf32>
    %c3 = arith.constant 3 : index
    %c0_50 = arith.constant 0 : index
    %133 = vector.load %arg4[%c3, %c0_50] : memref<14x32xf32, #tpu.memory_space<vmem>>, vector<1x32xf32>
    %cst_51 = arith.constant dense<0.000000e+00> : vector<16xf32>
    %134 = vector.multi_reduction <add>, %131, %cst_51 [1] : vector<16x32xf32> to vector<16xf32>
    %135 = vector.shape_cast %134 : vector<16xf32> to vector<16x1xf32>
    %cst_52 = arith.constant 3.200000e+01 : f32
    %136 = vector.broadcast %cst_52 : f32 to vector<16x1xf32>
    %137 = arith.divf %135, %136 : vector<16x1xf32>
    %138 = vector.broadcast %137 : vector<16x1xf32> to vector<16x32xf32>
    %139 = arith.subf %131, %138 : vector<16x32xf32>
    %140 = arith.mulf %139, %139 : vector<16x32xf32>
    %cst_53 = arith.constant dense<0.000000e+00> : vector<16xf32>
    %141 = vector.multi_reduction <add>, %140, %cst_53 [1] : vector<16x32xf32> to vector<16xf32>
    %142 = vector.shape_cast %141 : vector<16xf32> to vector<16x1xf32>
    %cst_54 = arith.constant 3.200000e+01 : f32
    %143 = vector.broadcast %cst_54 : f32 to vector<16x1xf32>
    %144 = arith.divf %142, %143 : vector<16x1xf32>
    %145 = vector.broadcast %137 : vector<16x1xf32> to vector<16x32xf32>
    %146 = arith.subf %131, %145 : vector<16x32xf32>
    %cst_55 = arith.constant 9.99999974E-6 : f32
    %147 = vector.broadcast %cst_55 : f32 to vector<16x1xf32>
    %148 = arith.addf %144, %147 : vector<16x1xf32>
    %149 = math.rsqrt %148 : vector<16x1xf32>
    %150 = vector.broadcast %149 : vector<16x1xf32> to vector<16x32xf32>
    %151 = arith.mulf %146, %150 : vector<16x32xf32>
    %152 = vector.broadcast %132 : vector<1x32xf32> to vector<16x32xf32>
    %153 = arith.mulf %151, %152 : vector<16x32xf32>
    %154 = vector.broadcast %133 : vector<1x32xf32> to vector<16x32xf32>
    %155 = arith.addf %153, %154 : vector<16x32xf32>
    %c0_56 = arith.constant 0 : index
    %c0_57 = arith.constant 0 : index
    %c0_58 = arith.constant 0 : index
    %156 = vector.load %arg8[%c0_56, %c0_57, %c0_58] : memref<2x32x128xf32, #tpu.memory_space<vmem>>, vector<1x32x128xf32>
    %157 = vector.shape_cast %156 : vector<1x32x128xf32> to vector<32x128xf32>
    %cst_59 = arith.constant dense<0.000000e+00> : vector<16x128xf32>
    %158 = tpu.matmul %155, %157, %cst_59 {dimension_numbers = #tpu.dot_dimension_numbers<[1], [0], [0], [1], [0, 0, 1, 1], [], []>} : vector<16x32xf32>, vector<32x128xf32>, vector<16x128xf32> -> vector<16x128xf32>
    %c0_60 = arith.constant 0 : index
    %c0_61 = arith.constant 0 : index
    %159 = vector.load %arg5[%c0_60, %c0_61] : memref<4x128xf32, #tpu.memory_space<vmem>>, vector<1x128xf32>
    %160 = vector.broadcast %159 : vector<1x128xf32> to vector<16x128xf32>
    %161 = arith.addf %158, %160 : vector<16x128xf32>
    %cst_62 = arith.constant 1.702000e+00 : f32
    %162 = vector.broadcast %cst_62 : f32 to vector<16x128xf32>
    %163 = arith.mulf %162, %161 : vector<16x128xf32>
    %164 = arith.negf %163 : vector<16x128xf32>
    %165 = math.exp %164 : vector<16x128xf32>
    %cst_63 = arith.constant 1.000000e+00 : f32
    %166 = vector.broadcast %cst_63 : f32 to vector<16x128xf32>
    %167 = arith.addf %166, %165 : vector<16x128xf32>
    %168 = arith.divf %166, %167 : vector<16x128xf32>
    %169 = arith.mulf %161, %168 : vector<16x128xf32>
    %c0_64 = arith.constant 0 : index
    %c0_65 = arith.constant 0 : index
    %c0_66 = arith.constant 0 : index
    %170 = vector.load %arg9[%c0_64, %c0_65, %c0_66] : memref<2x128x32xf32, #tpu.memory_space<vmem>>, vector<1x128x32xf32>
    %171 = vector.shape_cast %170 : vector<1x128x32xf32> to vector<128x32xf32>
    %cst_67 = arith.constant dense<0.000000e+00> : vector<16x32xf32>
    %172 = tpu.matmul %169, %171, %cst_67 {dimension_numbers = #tpu.dot_dimension_numbers<[1], [0], [0], [1], [0, 0, 1, 1], [], []>} : vector<16x128xf32>, vector<128x32xf32>, vector<16x32xf32> -> vector<16x32xf32>
    %173 = arith.addf %131, %172 : vector<16x32xf32>
    %c5 = arith.constant 5 : index
    %c0_68 = arith.constant 0 : index
    %174 = vector.load %arg4[%c5, %c0_68] : memref<14x32xf32, #tpu.memory_space<vmem>>, vector<1x32xf32>
    %175 = vector.broadcast %174 : vector<1x32xf32> to vector<16x32xf32>
    %176 = arith.addf %173, %175 : vector<16x32xf32>
    %c6 = arith.constant 6 : index
    %c0_69 = arith.constant 0 : index
    %177 = vector.load %arg4[%c6, %c0_69] : memref<14x32xf32, #tpu.memory_space<vmem>>, vector<1x32xf32>
    %c7 = arith.constant 7 : index
    %c0_70 = arith.constant 0 : index
    %178 = vector.load %arg4[%c7, %c0_70] : memref<14x32xf32, #tpu.memory_space<vmem>>, vector<1x32xf32>
    %cst_71 = arith.constant dense<0.000000e+00> : vector<16xf32>
    %179 = vector.multi_reduction <add>, %176, %cst_71 [1] : vector<16x32xf32> to vector<16xf32>
    %180 = vector.shape_cast %179 : vector<16xf32> to vector<16x1xf32>
    %cst_72 = arith.constant 3.200000e+01 : f32
    %181 = vector.broadcast %cst_72 : f32 to vector<16x1xf32>
    %182 = arith.divf %180, %181 : vector<16x1xf32>
    %183 = vector.broadcast %182 : vector<16x1xf32> to vector<16x32xf32>
    %184 = arith.subf %176, %183 : vector<16x32xf32>
    %185 = arith.mulf %184, %184 : vector<16x32xf32>
    %cst_73 = arith.constant dense<0.000000e+00> : vector<16xf32>
    %186 = vector.multi_reduction <add>, %185, %cst_73 [1] : vector<16x32xf32> to vector<16xf32>
    %187 = vector.shape_cast %186 : vector<16xf32> to vector<16x1xf32>
    %cst_74 = arith.constant 3.200000e+01 : f32
    %188 = vector.broadcast %cst_74 : f32 to vector<16x1xf32>
    %189 = arith.divf %187, %188 : vector<16x1xf32>
    %190 = vector.broadcast %182 : vector<16x1xf32> to vector<16x32xf32>
    %191 = arith.subf %176, %190 : vector<16x32xf32>
    %cst_75 = arith.constant 9.99999974E-6 : f32
    %192 = vector.broadcast %cst_75 : f32 to vector<16x1xf32>
    %193 = arith.addf %189, %192 : vector<16x1xf32>
    %194 = math.rsqrt %193 : vector<16x1xf32>
    %195 = vector.broadcast %194 : vector<16x1xf32> to vector<16x32xf32>
    %196 = arith.mulf %191, %195 : vector<16x32xf32>
    %197 = vector.broadcast %177 : vector<1x32xf32> to vector<16x32xf32>
    %198 = arith.mulf %196, %197 : vector<16x32xf32>
    %199 = vector.broadcast %178 : vector<1x32xf32> to vector<16x32xf32>
    %200 = arith.addf %198, %199 : vector<16x32xf32>
    %c1_76 = arith.constant 1 : index
    %c0_77 = arith.constant 0 : index
    %c0_78 = arith.constant 0 : index
    %201 = vector.load %arg6[%c1_76, %c0_77, %c0_78] : memref<2x32x96xf32, #tpu.memory_space<vmem>>, vector<1x32x96xf32>
    %202 = vector.shape_cast %201 : vector<1x32x96xf32> to vector<32x96xf32>
    %cst_79 = arith.constant dense<0.000000e+00> : vector<16x96xf32>
    %203 = tpu.matmul %200, %202, %cst_79 {dimension_numbers = #tpu.dot_dimension_numbers<[1], [0], [0], [1], [0, 0, 1, 1], [], []>} : vector<16x32xf32>, vector<32x96xf32>, vector<16x96xf32> -> vector<16x96xf32>
    %c3_80 = arith.constant 3 : index
    %c0_81 = arith.constant 0 : index
    %204 = vector.load %arg5[%c3_80, %c0_81] : memref<4x128xf32, #tpu.memory_space<vmem>>, vector<1x96xf32>
    %205 = vector.broadcast %204 : vector<1x96xf32> to vector<16x96xf32>
    %206 = arith.addf %203, %205 : vector<16x96xf32>
    %207 = vector.extract_strided_slice %206 {offsets = [0, 0], sizes = [16, 8], strides = [1, 1]} : vector<16x96xf32> to vector<16x8xf32>
    %cst_82 = arith.constant 0.353553385 : f32
    %208 = vector.broadcast %cst_82 : f32 to vector<16x8xf32>
    %209 = arith.mulf %207, %208 : vector<16x8xf32>
    %210 = vector.extract_strided_slice %206 {offsets = [0, 32], sizes = [16, 8], strides = [1, 1]} : vector<16x96xf32> to vector<16x8xf32>
    %211 = vector.extract_strided_slice %206 {offsets = [0, 64], sizes = [16, 8], strides = [1, 1]} : vector<16x96xf32> to vector<16x8xf32>
    "tpu.trace_start"() <{level = 10 : i32, message = "qd,kd->qk"}> : () -> ()
    %cst_83 = arith.constant dense<0.000000e+00> : vector<16x16xf32>
    %212 = tpu.matmul %209, %210, %cst_83 {dimension_numbers = #tpu.dot_dimension_numbers<[1], [1], [0], [0], [0, 0, 1, 0], [], []>} : vector<16x8xf32>, vector<16x8xf32>, vector<16x16xf32> -> vector<16x16xf32>
    "tpu.trace_stop"() : () -> ()
    %213 = arith.addf %212, %5 : vector<16x16xf32>
    %cst_84 = arith.constant dense<0xFF800000> : vector<16xf32>
    %214 = vector.multi_reduction <maximumf>, %213, %cst_84 [1] : vector<16x16xf32> to vector<16xf32>
    %215 = vector.shape_cast %214 : vector<16xf32> to vector<16x1xf32>
    %216 = vector.broadcast %215 : vector<16x1xf32> to vector<16x16xf32>
    %217 = arith.subf %213, %216 : vector<16x16xf32>
    %218 = math.exp %217 : vector<16x16xf32>
    %cst_85 = arith.constant dense<0.000000e+00> : vector<16xf32>
    %219 = vector.multi_reduction <add>, %218, %cst_85 [1] : vector<16x16xf32> to vector<16xf32>
    %220 = vector.shape_cast %219 : vector<16xf32> to vector<16x1xf32>
    %221 = tpu.reciprocal %220 {approx = true} : vector<16x1xf32> -> vector<16x1xf32>
    %222 = arith.mulf %220, %221 : vector<16x1xf32>
    %cst_86 = arith.constant 2.000000e+00 : f32
    %223 = vector.broadcast %cst_86 : f32 to vector<16x1xf32>
    %224 = arith.subf %223, %222 : vector<16x1xf32>
    %225 = arith.mulf %221, %224 : vector<16x1xf32>
    %226 = vector.broadcast %225 : vector<16x1xf32> to vector<16x16xf32>
    %227 = arith.mulf %218, %226 : vector<16x16xf32>
    %cst_87 = arith.constant dense<0.000000e+00> : vector<16x8xf32>
    %228 = tpu.matmul %227, %211, %cst_87 {dimension_numbers = #tpu.dot_dimension_numbers<[1], [0], [0], [1], [0, 0, 1, 1], [], []>} : vector<16x16xf32>, vector<16x8xf32>, vector<16x8xf32> -> vector<16x8xf32>
    %229 = vector.extract_strided_slice %206 {offsets = [0, 8], sizes = [16, 8], strides = [1, 1]} : vector<16x96xf32> to vector<16x8xf32>
    %cst_88 = arith.constant 0.353553385 : f32
    %230 = vector.broadcast %cst_88 : f32 to vector<16x8xf32>
    %231 = arith.mulf %229, %230 : vector<16x8xf32>
    %232 = vector.extract_strided_slice %206 {offsets = [0, 40], sizes = [16, 8], strides = [1, 1]} : vector<16x96xf32> to vector<16x8xf32>
    %233 = vector.extract_strided_slice %206 {offsets = [0, 72], sizes = [16, 8], strides = [1, 1]} : vector<16x96xf32> to vector<16x8xf32>
    "tpu.trace_start"() <{level = 10 : i32, message = "qd,kd->qk"}> : () -> ()
    %cst_89 = arith.constant dense<0.000000e+00> : vector<16x16xf32>
    %234 = tpu.matmul %231, %232, %cst_89 {dimension_numbers = #tpu.dot_dimension_numbers<[1], [1], [0], [0], [0, 0, 1, 0], [], []>} : vector<16x8xf32>, vector<16x8xf32>, vector<16x16xf32> -> vector<16x16xf32>
    "tpu.trace_stop"() : () -> ()
    %235 = arith.addf %234, %5 : vector<16x16xf32>
    %cst_90 = arith.constant dense<0xFF800000> : vector<16xf32>
    %236 = vector.multi_reduction <maximumf>, %235, %cst_90 [1] : vector<16x16xf32> to vector<16xf32>
    %237 = vector.shape_cast %236 : vector<16xf32> to vector<16x1xf32>
    %238 = vector.broadcast %237 : vector<16x1xf32> to vector<16x16xf32>
    %239 = arith.subf %235, %238 : vector<16x16xf32>
    %240 = math.exp %239 : vector<16x16xf32>
    %cst_91 = arith.constant dense<0.000000e+00> : vector<16xf32>
    %241 = vector.multi_reduction <add>, %240, %cst_91 [1] : vector<16x16xf32> to vector<16xf32>
    %242 = vector.shape_cast %241 : vector<16xf32> to vector<16x1xf32>
    %243 = tpu.reciprocal %242 {approx = true} : vector<16x1xf32> -> vector<16x1xf32>
    %244 = arith.mulf %242, %243 : vector<16x1xf32>
    %cst_92 = arith.constant 2.000000e+00 : f32
    %245 = vector.broadcast %cst_92 : f32 to vector<16x1xf32>
    %246 = arith.subf %245, %244 : vector<16x1xf32>
    %247 = arith.mulf %243, %246 : vector<16x1xf32>
    %248 = vector.broadcast %247 : vector<16x1xf32> to vector<16x16xf32>
    %249 = arith.mulf %240, %248 : vector<16x16xf32>
    %cst_93 = arith.constant dense<0.000000e+00> : vector<16x8xf32>
    %250 = tpu.matmul %249, %233, %cst_93 {dimension_numbers = #tpu.dot_dimension_numbers<[1], [0], [0], [1], [0, 0, 1, 1], [], []>} : vector<16x16xf32>, vector<16x8xf32>, vector<16x8xf32> -> vector<16x8xf32>
    %251 = vector.extract_strided_slice %206 {offsets = [0, 16], sizes = [16, 8], strides = [1, 1]} : vector<16x96xf32> to vector<16x8xf32>
    %cst_94 = arith.constant 0.353553385 : f32
    %252 = vector.broadcast %cst_94 : f32 to vector<16x8xf32>
    %253 = arith.mulf %251, %252 : vector<16x8xf32>
    %254 = vector.extract_strided_slice %206 {offsets = [0, 48], sizes = [16, 8], strides = [1, 1]} : vector<16x96xf32> to vector<16x8xf32>
    %255 = vector.extract_strided_slice %206 {offsets = [0, 80], sizes = [16, 8], strides = [1, 1]} : vector<16x96xf32> to vector<16x8xf32>
    "tpu.trace_start"() <{level = 10 : i32, message = "qd,kd->qk"}> : () -> ()
    %cst_95 = arith.constant dense<0.000000e+00> : vector<16x16xf32>
    %256 = tpu.matmul %253, %254, %cst_95 {dimension_numbers = #tpu.dot_dimension_numbers<[1], [1], [0], [0], [0, 0, 1, 0], [], []>} : vector<16x8xf32>, vector<16x8xf32>, vector<16x16xf32> -> vector<16x16xf32>
    "tpu.trace_stop"() : () -> ()
    %257 = arith.addf %256, %5 : vector<16x16xf32>
    %cst_96 = arith.constant dense<0xFF800000> : vector<16xf32>
    %258 = vector.multi_reduction <maximumf>, %257, %cst_96 [1] : vector<16x16xf32> to vector<16xf32>
    %259 = vector.shape_cast %258 : vector<16xf32> to vector<16x1xf32>
    %260 = vector.broadcast %259 : vector<16x1xf32> to vector<16x16xf32>
    %261 = arith.subf %257, %260 : vector<16x16xf32>
    %262 = math.exp %261 : vector<16x16xf32>
    %cst_97 = arith.constant dense<0.000000e+00> : vector<16xf32>
    %263 = vector.multi_reduction <add>, %262, %cst_97 [1] : vector<16x16xf32> to vector<16xf32>
    %264 = vector.shape_cast %263 : vector<16xf32> to vector<16x1xf32>
    %265 = tpu.reciprocal %264 {approx = true} : vector<16x1xf32> -> vector<16x1xf32>
    %266 = arith.mulf %264, %265 : vector<16x1xf32>
    %cst_98 = arith.constant 2.000000e+00 : f32
    %267 = vector.broadcast %cst_98 : f32 to vector<16x1xf32>
    %268 = arith.subf %267, %266 : vector<16x1xf32>
    %269 = arith.mulf %265, %268 : vector<16x1xf32>
    %270 = vector.broadcast %269 : vector<16x1xf32> to vector<16x16xf32>
    %271 = arith.mulf %262, %270 : vector<16x16xf32>
    %cst_99 = arith.constant dense<0.000000e+00> : vector<16x8xf32>
    %272 = tpu.matmul %271, %255, %cst_99 {dimension_numbers = #tpu.dot_dimension_numbers<[1], [0], [0], [1], [0, 0, 1, 1], [], []>} : vector<16x16xf32>, vector<16x8xf32>, vector<16x8xf32> -> vector<16x8xf32>
    %273 = vector.extract_strided_slice %206 {offsets = [0, 24], sizes = [16, 8], strides = [1, 1]} : vector<16x96xf32> to vector<16x8xf32>
    %cst_100 = arith.constant 0.353553385 : f32
    %274 = vector.broadcast %cst_100 : f32 to vector<16x8xf32>
    %275 = arith.mulf %273, %274 : vector<16x8xf32>
    %276 = vector.extract_strided_slice %206 {offsets = [0, 56], sizes = [16, 8], strides = [1, 1]} : vector<16x96xf32> to vector<16x8xf32>
    %277 = vector.extract_strided_slice %206 {offsets = [0, 88], sizes = [16, 8], strides = [1, 1]} : vector<16x96xf32> to vector<16x8xf32>
    "tpu.trace_start"() <{level = 10 : i32, message = "qd,kd->qk"}> : () -> ()
    %cst_101 = arith.constant dense<0.000000e+00> : vector<16x16xf32>
    %278 = tpu.matmul %275, %276, %cst_101 {dimension_numbers = #tpu.dot_dimension_numbers<[1], [1], [0], [0], [0, 0, 1, 0], [], []>} : vector<16x8xf32>, vector<16x8xf32>, vector<16x16xf32> -> vector<16x16xf32>
    "tpu.trace_stop"() : () -> ()
    %279 = arith.addf %278, %5 : vector<16x16xf32>
    %cst_102 = arith.constant dense<0xFF800000> : vector<16xf32>
    %280 = vector.multi_reduction <maximumf>, %279, %cst_102 [1] : vector<16x16xf32> to vector<16xf32>
    %281 = vector.shape_cast %280 : vector<16xf32> to vector<16x1xf32>
    %282 = vector.broadcast %281 : vector<16x1xf32> to vector<16x16xf32>
    %283 = arith.subf %279, %282 : vector<16x16xf32>
    %284 = math.exp %283 : vector<16x16xf32>
    %cst_103 = arith.constant dense<0.000000e+00> : vector<16xf32>
    %285 = vector.multi_reduction <add>, %284, %cst_103 [1] : vector<16x16xf32> to vector<16xf32>
    %286 = vector.shape_cast %285 : vector<16xf32> to vector<16x1xf32>
    %287 = tpu.reciprocal %286 {approx = true} : vector<16x1xf32> -> vector<16x1xf32>
    %288 = arith.mulf %286, %287 : vector<16x1xf32>
    %cst_104 = arith.constant 2.000000e+00 : f32
    %289 = vector.broadcast %cst_104 : f32 to vector<16x1xf32>
    %290 = arith.subf %289, %288 : vector<16x1xf32>
    %291 = arith.mulf %287, %290 : vector<16x1xf32>
    %292 = vector.broadcast %291 : vector<16x1xf32> to vector<16x16xf32>
    %293 = arith.mulf %284, %292 : vector<16x16xf32>
    %cst_105 = arith.constant dense<0.000000e+00> : vector<16x8xf32>
    %294 = tpu.matmul %293, %277, %cst_105 {dimension_numbers = #tpu.dot_dimension_numbers<[1], [0], [0], [1], [0, 0, 1, 1], [], []>} : vector<16x16xf32>, vector<16x8xf32>, vector<16x8xf32> -> vector<16x8xf32>
    %295 = tpu.concatenate %228, %250, %272, %294 in 1 : vector<16x8xf32>, vector<16x8xf32>, vector<16x8xf32>, vector<16x8xf32> -> vector<16x32xf32>
    %c1_106 = arith.constant 1 : index
    %c0_107 = arith.constant 0 : index
    %c0_108 = arith.constant 0 : index
    %296 = vector.load %arg7[%c1_106, %c0_107, %c0_108] : memref<2x32x32xf32, #tpu.memory_space<vmem>>, vector<1x32x32xf32>
    %297 = vector.shape_cast %296 : vector<1x32x32xf32> to vector<32x32xf32>
    %cst_109 = arith.constant dense<0.000000e+00> : vector<16x32xf32>
    %298 = tpu.matmul %295, %297, %cst_109 {dimension_numbers = #tpu.dot_dimension_numbers<[1], [0], [0], [1], [0, 0, 1, 1], [], []>} : vector<16x32xf32>, vector<32x32xf32>, vector<16x32xf32> -> vector<16x32xf32>
    %299 = arith.addf %176, %298 : vector<16x32xf32>
    %c10 = arith.constant 10 : index
    %c0_110 = arith.constant 0 : index
    %300 = vector.load %arg4[%c10, %c0_110] : memref<14x32xf32, #tpu.memory_space<vmem>>, vector<1x32xf32>
    %301 = vector.broadcast %300 : vector<1x32xf32> to vector<16x32xf32>
    %302 = arith.addf %299, %301 : vector<16x32xf32>
    %c8 = arith.constant 8 : index
    %c0_111 = arith.constant 0 : index
    %303 = vector.load %arg4[%c8, %c0_111] : memref<14x32xf32, #tpu.memory_space<vmem>>, vector<1x32xf32>
    %c9 = arith.constant 9 : index
    %c0_112 = arith.constant 0 : index
    %304 = vector.load %arg4[%c9, %c0_112] : memref<14x32xf32, #tpu.memory_space<vmem>>, vector<1x32xf32>
    %cst_113 = arith.constant dense<0.000000e+00> : vector<16xf32>
    %305 = vector.multi_reduction <add>, %302, %cst_113 [1] : vector<16x32xf32> to vector<16xf32>
    %306 = vector.shape_cast %305 : vector<16xf32> to vector<16x1xf32>
    %cst_114 = arith.constant 3.200000e+01 : f32
    %307 = vector.broadcast %cst_114 : f32 to vector<16x1xf32>
    %308 = arith.divf %306, %307 : vector<16x1xf32>
    %309 = vector.broadcast %308 : vector<16x1xf32> to vector<16x32xf32>
    %310 = arith.subf %302, %309 : vector<16x32xf32>
    %311 = arith.mulf %310, %310 : vector<16x32xf32>
    %cst_115 = arith.constant dense<0.000000e+00> : vector<16xf32>
    %312 = vector.multi_reduction <add>, %311, %cst_115 [1] : vector<16x32xf32> to vector<16xf32>
    %313 = vector.shape_cast %312 : vector<16xf32> to vector<16x1xf32>
    %cst_116 = arith.constant 3.200000e+01 : f32
    %314 = vector.broadcast %cst_116 : f32 to vector<16x1xf32>
    %315 = arith.divf %313, %314 : vector<16x1xf32>
    %316 = vector.broadcast %308 : vector<16x1xf32> to vector<16x32xf32>
    %317 = arith.subf %302, %316 : vector<16x32xf32>
    %cst_117 = arith.constant 9.99999974E-6 : f32
    %318 = vector.broadcast %cst_117 : f32 to vector<16x1xf32>
    %319 = arith.addf %315, %318 : vector<16x1xf32>
    %320 = math.rsqrt %319 : vector<16x1xf32>
    %321 = vector.broadcast %320 : vector<16x1xf32> to vector<16x32xf32>
    %322 = arith.mulf %317, %321 : vector<16x32xf32>
    %323 = vector.broadcast %303 : vector<1x32xf32> to vector<16x32xf32>
    %324 = arith.mulf %322, %323 : vector<16x32xf32>
    %325 = vector.broadcast %304 : vector<1x32xf32> to vector<16x32xf32>
    %326 = arith.addf %324, %325 : vector<16x32xf32>
    %c1_118 = arith.constant 1 : index
    %c0_119 = arith.constant 0 : index
    %c0_120 = arith.constant 0 : index
    %327 = vector.load %arg8[%c1_118, %c0_119, %c0_120] : memref<2x32x128xf32, #tpu.memory_space<vmem>>, vector<1x32x128xf32>
    %328 = vector.shape_cast %327 : vector<1x32x128xf32> to vector<32x128xf32>
    %cst_121 = arith.constant dense<0.000000e+00> : vector<16x128xf32>
    %329 = tpu.matmul %326, %328, %cst_121 {dimension_numbers = #tpu.dot_dimension_numbers<[1], [0], [0], [1], [0, 0, 1, 1], [], []>} : vector<16x32xf32>, vector<32x128xf32>, vector<16x128xf32> -> vector<16x128xf32>
    %c2_122 = arith.constant 2 : index
    %c0_123 = arith.constant 0 : index
    %330 = vector.load %arg5[%c2_122, %c0_123] : memref<4x128xf32, #tpu.memory_space<vmem>>, vector<1x128xf32>
    %331 = vector.broadcast %330 : vector<1x128xf32> to vector<16x128xf32>
    %332 = arith.addf %329, %331 : vector<16x128xf32>
    %cst_124 = arith.constant 1.702000e+00 : f32
    %333 = vector.broadcast %cst_124 : f32 to vector<16x128xf32>
    %334 = arith.mulf %333, %332 : vector<16x128xf32>
    %335 = arith.negf %334 : vector<16x128xf32>
    %336 = math.exp %335 : vector<16x128xf32>
    %cst_125 = arith.constant 1.000000e+00 : f32
    %337 = vector.broadcast %cst_125 : f32 to vector<16x128xf32>
    %338 = arith.addf %337, %336 : vector<16x128xf32>
    %339 = arith.divf %337, %338 : vector<16x128xf32>
    %340 = arith.mulf %332, %339 : vector<16x128xf32>
    %c1_126 = arith.constant 1 : index
    %c0_127 = arith.constant 0 : index
    %c0_128 = arith.constant 0 : index
    %341 = vector.load %arg9[%c1_126, %c0_127, %c0_128] : memref<2x128x32xf32, #tpu.memory_space<vmem>>, vector<1x128x32xf32>
    %342 = vector.shape_cast %341 : vector<1x128x32xf32> to vector<128x32xf32>
    %cst_129 = arith.constant dense<0.000000e+00> : vector<16x32xf32>
    %343 = tpu.matmul %340, %342, %cst_129 {dimension_numbers = #tpu.dot_dimension_numbers<[1], [0], [0], [1], [0, 0, 1, 1], [], []>} : vector<16x128xf32>, vector<128x32xf32>, vector<16x32xf32> -> vector<16x32xf32>
    %344 = arith.addf %302, %343 : vector<16x32xf32>
    %c11 = arith.constant 11 : index
    %c0_130 = arith.constant 0 : index
    %345 = vector.load %arg4[%c11, %c0_130] : memref<14x32xf32, #tpu.memory_space<vmem>>, vector<1x32xf32>
    %346 = vector.broadcast %345 : vector<1x32xf32> to vector<16x32xf32>
    %347 = arith.addf %344, %346 : vector<16x32xf32>
    %c12 = arith.constant 12 : index
    %c0_131 = arith.constant 0 : index
    %348 = vector.load %arg4[%c12, %c0_131] : memref<14x32xf32, #tpu.memory_space<vmem>>, vector<1x32xf32>
    %c13 = arith.constant 13 : index
    %c0_132 = arith.constant 0 : index
    %349 = vector.load %arg4[%c13, %c0_132] : memref<14x32xf32, #tpu.memory_space<vmem>>, vector<1x32xf32>
    %cst_133 = arith.constant dense<0.000000e+00> : vector<16xf32>
    %350 = vector.multi_reduction <add>, %347, %cst_133 [1] : vector<16x32xf32> to vector<16xf32>
    %351 = vector.shape_cast %350 : vector<16xf32> to vector<16x1xf32>
    %cst_134 = arith.constant 3.200000e+01 : f32
    %352 = vector.broadcast %cst_134 : f32 to vector<16x1xf32>
    %353 = arith.divf %351, %352 : vector<16x1xf32>
    %354 = vector.broadcast %353 : vector<16x1xf32> to vector<16x32xf32>
    %355 = arith.subf %347, %354 : vector<16x32xf32>
    %356 = arith.mulf %355, %355 : vector<16x32xf32>
    %cst_135 = arith.constant dense<0.000000e+00> : vector<16xf32>
    %357 = vector.multi_reduction <add>, %356, %cst_135 [1] : vector<16x32xf32> to vector<16xf32>
    %358 = vector.shape_cast %357 : vector<16xf32> to vector<16x1xf32>
    %cst_136 = arith.constant 3.200000e+01 : f32
    %359 = vector.broadcast %cst_136 : f32 to vector<16x1xf32>
    %360 = arith.divf %358, %359 : vector<16x1xf32>
    %361 = vector.broadcast %353 : vector<16x1xf32> to vector<16x32xf32>
    %362 = arith.subf %347, %361 : vector<16x32xf32>
    %cst_137 = arith.constant 9.99999974E-6 : f32
    %363 = vector.broadcast %cst_137 : f32 to vector<16x1xf32>
    %364 = arith.addf %360, %363 : vector<16x1xf32>
    %365 = math.rsqrt %364 : vector<16x1xf32>
    %366 = vector.broadcast %365 : vector<16x1xf32> to vector<16x32xf32>
    %367 = arith.mulf %362, %366 : vector<16x32xf32>
    %368 = vector.broadcast %348 : vector<1x32xf32> to vector<16x32xf32>
    %369 = arith.mulf %367, %368 : vector<16x32xf32>
    %370 = vector.broadcast %349 : vector<1x32xf32> to vector<16x32xf32>
    %371 = arith.addf %369, %370 : vector<16x32xf32>
    %c0_138 = arith.constant 0 : index
    %c0_139 = arith.constant 0 : index
    %372 = vector.load %arg12[%c0_138, %c0_139] : memref<16x32xf32, #tpu.memory_space<vmem>>, vector<16x32xf32>
    tpu.vector_store %arg12[%c0_138, %c0_139], %371 {strides = array<i32>} : memref<16x32xf32, #tpu.memory_space<vmem>>, vector<16x32xf32>,
    %c0_140 = arith.constant 0 : index
    %373 = memref.load %arg1[%c0_140] : memref<2xi32, #tpu.memory_space<smem>>
    %c0_i32 = arith.constant 0 : i32
    %374 = arith.addi %c0_i32, %373 : i32
    %375 = arith.index_cast %374 : i32 to index
    %c0_141 = arith.constant 0 : index
    %376 = vector.load %arg12[%375, %c0_141] : memref<16x32xf32, #tpu.memory_space<vmem>>, vector<1x32xf32>
    %c1_142 = arith.constant 1 : index
    %377 = memref.load %arg1[%c1_142] : memref<2xi32, #tpu.memory_space<smem>>
    %c8_i32 = arith.constant 8 : i32
    %378 = arith.addi %c8_i32, %377 : i32
    %379 = arith.index_cast %378 : i32 to index
    %c0_143 = arith.constant 0 : index
    %380 = vector.load %arg12[%379, %c0_143] : memref<16x32xf32, #tpu.memory_space<vmem>>, vector<1x32xf32>
    %381 = tpu.concatenate %376, %380 in 0 : vector<1x32xf32>, vector<1x32xf32> -> vector<2x32xf32>
    %c0_144 = arith.constant 0 : index
    %c0_145 = arith.constant 0 : index
    %382 = vector.load %arg10[%c0_144, %c0_145] : memref<32x16xf32, #tpu.memory_space<vmem>>, vector<32x16xf32>
    %cst_146 = arith.constant dense<0.000000e+00> : vector<2x16xf32>
    %383 = tpu.matmul %381, %382, %cst_146 {dimension_numbers = #tpu.dot_dimension_numbers<[1], [0], [0], [1], [0, 0, 1, 1], [], []>} : vector<2x32xf32>, vector<32x16xf32>, vector<2x16xf32> -> vector<2x16xf32>
    %c0_147 = arith.constant 0 : index
    %c0_148 = arith.constant 0 : index
    %384 = vector.load %arg11[%c0_147, %c0_148] : memref<2x16xf32, #tpu.memory_space<vmem>>, vector<2x16xf32>
    tpu.vector_store %arg11[%c0_147, %c0_148], %383 {strides = array<i32>} : memref<2x16xf32, #tpu.memory_space<vmem>>, vector<2x16xf32>,
    return
  }
  func.func @transform_0(%arg0: i32, %arg1: memref<2xi32, #tpu.memory_space<smem>>) -> (i32, i32, i32) {
    %c0_i32 = arith.constant 0 : i32
    %c0_i32_0 = arith.constant 0 : i32
    %c0_i32_1 = arith.constant 0 : i32
    %c0_i32_2 = arith.constant 0 : i32
    return %c0_i32, %c0_i32_0, %c0_i32_1 : i32, i32, i32
  }
  func.func @transform_1(%arg0: i32, %arg1: memref<2xi32, #tpu.memory_space<smem>>) -> (i32, i32) {
    %c0_i32 = arith.constant 0 : i32
    %c0_i32_0 = arith.constant 0 : i32
    %c0_i32_1 = arith.constant 0 : i32
    return %c0_i32, %c0_i32_0 : i32, i32
  }
  func.func @transform_2(%arg0: i32, %arg1: memref<2xi32, #tpu.memory_space<smem>>) -> (i32, i32) {
    %c0_i32 = arith.constant 0 : i32
    %c0_i32_0 = arith.constant 0 : i32
    %c0_i32_1 = arith.constant 0 : i32
    return %c0_i32, %c0_i32_0 : i32, i32
  }
  func.func @transform_3(%arg0: i32, %arg1: memref<2xi32, #tpu.memory_space<smem>>) -> (i32, i32) {
    %c0_i32 = arith.constant 0 : i32
    %c0_i32_0 = arith.constant 0 : i32
    %c0_i32_1 = arith.constant 0 : i32
    return %c0_i32, %c0_i32_0 : i32, i32
  }
  func.func @transform_4(%arg0: i32, %arg1: memref<2xi32, #tpu.memory_space<smem>>) -> (i32, i32, i32) {
    %c0_i32 = arith.constant 0 : i32
    %c0_i32_0 = arith.constant 0 : i32
    %c0_i32_1 = arith.constant 0 : i32
    %c0_i32_2 = arith.constant 0 : i32
    return %c0_i32, %c0_i32_0, %c0_i32_1 : i32, i32, i32
  }
  func.func @transform_5(%arg0: i32, %arg1: memref<2xi32, #tpu.memory_space<smem>>) -> (i32, i32, i32) {
    %c0_i32 = arith.constant 0 : i32
    %c0_i32_0 = arith.constant 0 : i32
    %c0_i32_1 = arith.constant 0 : i32
    %c0_i32_2 = arith.constant 0 : i32
    return %c0_i32, %c0_i32_0, %c0_i32_1 : i32, i32, i32
  }
  func.func @transform_6(%arg0: i32, %arg1: memref<2xi32, #tpu.memory_space<smem>>) -> (i32, i32, i32) {
    %c0_i32 = arith.constant 0 : i32
    %c0_i32_0 = arith.constant 0 : i32
    %c0_i32_1 = arith.constant 0 : i32
    %c0_i32_2 = arith.constant 0 : i32
    return %c0_i32, %c0_i32_0, %c0_i32_1 : i32, i32, i32
  }
  func.func @transform_7(%arg0: i32, %arg1: memref<2xi32, #tpu.memory_space<smem>>) -> (i32, i32, i32) {
    %c0_i32 = arith.constant 0 : i32
    %c0_i32_0 = arith.constant 0 : i32
    %c0_i32_1 = arith.constant 0 : i32
    %c0_i32_2 = arith.constant 0 : i32
    return %c0_i32, %c0_i32_0, %c0_i32_1 : i32, i32, i32
  }
  func.func @transform_8(%arg0: i32, %arg1: memref<2xi32, #tpu.memory_space<smem>>) -> (i32, i32) {
    %c0_i32 = arith.constant 0 : i32
    %c0_i32_0 = arith.constant 0 : i32
    %c0_i32_1 = arith.constant 0 : i32
    return %c0_i32, %c0_i32_0 : i32, i32
  }
  func.func @transform_9(%arg0: i32, %arg1: memref<2xi32, #tpu.memory_space<smem>>) -> (i32, i32) {
    %c0_i32 = arith.constant 0 : i32
    %c0_i32_0 = arith.constant 0 : i32
    %c0_i32_1 = arith.constant 0 : i32
    return %c0_i32, %c0_i32_0 : i32, i32
  }
}

</mosaic_0001>

<bundles_post_ra>
// kernel: tpu_custom_call.1
= control target key start
LH: loop header
LB: loop body
LE: loop exit
PB: predicated region body
PF: predicated region fallthrough
CT: control target
= control target key end

     0   :  { %s1978_s16 = smov [#allocation4]   ;;  %s2638_s0 = inlined_call_operand.vmem [shape: s32[2], index: 0, kind: input, shape index: {}]   ;;  %s2639_s1 = inlined_call_operand.vmem [shape: f32[2,16,32], index: 1, kind: input, shape index: {}]   ;;  %s2640_s2 = inlined_call_operand.vmem [shape: f32[16,16], index: 2, kind: input, shape index: {}]   ;;  %s2641_s3 = inlined_call_operand.vmem [shape: f32[14,32], index: 3, kind: input, shape index: {}]   ;;  %s2642_s4 = inlined_call_operand.vmem [shape: f32[4,128], index: 4, kind: input, shape index: {}]   ;;  %s2643_s5 = inlined_call_operand.vmem [shape: f32[2,32,96], index: 5, kind: input, shape index: {}]   ;;  %s2644_s6 = inlined_call_operand.vmem [shape: f32[2,32,32], index: 6, kind: input, shape index: {}]   ;;  %s2645_s7 = inlined_call_operand.vmem [shape: f32[2,32,128], index: 7, kind: input, shape index: {}]   ;;  %s2646_s8 = inlined_call_operand.vmem [shape: f32[2,128,32], index: 8, kind: input, shape index: {}]   ;;  %s2647_s9 = inlined_call_operand.vmem [shape: f32[32,16], index: 9, kind: input, shape index: {}]   ;;  %s2648_s10 = inlined_call_operand.hbm [shape: f32[2,16], index: 10, kind: output, shape index: {}]  }
   0x1   :  { %s16_s15 = sshll.u32 %s2638_s0, 4  ;;  %s17_s15 = int_to_ptr.vmem [resolvable:$true] %s16_s15 }
   0x2   :  { %19 = dma.vmem_to_smem %s17_s15, 16, %s1978_s16, [#allocation3] }
   0x3   :  { %1974 = dma.done.wait [#allocation3], 16 }
   0x4   :  { %1975 = vsyncadd [#allocation3], 4294967280 }
   0x5   :  { %22 = sfence }
   0x6   :  { %v42_v0 = vld [vmem:[%s2639_s1] sm:$0xff]  ;;  %v1660_v1 = vld [vmem:[%s2639_s1 + $0x10] sm:$0xff]  ;;  %vm53_vm0 = vcmask 261120   ;;  %v43_v2 = vld [vmem:[%s2639_s1 + $0x8] sm:$0xff] }
   0x7   :  { %v2062_v3 = vadd.f32 %v1660_v1, %v42_v0  ;;  %v1661_v4 = vld [vmem:[%s2639_s1 + $0x18] sm:$0xff] }
   0x8   :  { %v2069_v6 = vadd.f32 %v1661_v4, %v43_v2 }
   0x9   :  { %v54_v5 = vsel %vm53_vm0, %v2062_v3, 0.0 }
   0xa   :  { %55 = vadd.xlane.f32.xlu0 %v54_v5 }
   0xb   :  { %23 = vsyncpa [#allocation6], 0  ;;  %v57_v7 = vsel %vm53_vm0, %v2069_v6, 0.0  ;;  %v1979_v8 = vmov 32.0   ;;  %v114_v25 = vld [vmem:[%s2643_s5 + $0x18] sm:$0xff]  ;;  %v113_v26 = vld [vmem:[%s2643_s5 + $0x10] sm:$0xff] }
   0xc   :  { %1834 = vrcp.f32 %v1979_v8  ;;  %135 = vmatpush.msra.mxu0 %v114_v25  ;;  %v112_v27 = vld [vmem:[%s2643_s5 + $0x8] sm:$0xff]  ;;  %v111_v28 = vld [vmem:[%s2643_s5] sm:$0xff]  ;;  %s1980_s17 = smov 96   ;;  %s1981_s18 = smov 88   ;;  %vm154_vm8 = vcmask 64512   ;;  %vm188_vm9 = vcmask 130048  }
   0xd   :  { %v1816_v43 = vld [vmem:[%s2641_s3] ss:$0 sm:$0xff]  ;;  %v1817_v47 = vld [vmem:[%s2641_s3 + $0x1] ss:$0 sm:$0xff]  ;;  %s1982_s19 = smov 80   ;;  %s1983_s20 = smov 112  }
   0xe   :  { %136 = vmatpush.msra.mxu0 %v113_v26  ;;  %v1818_v57 = vld [vmem:[%s2642_s4 + $0x1] ss:$0 sm:$0xff]  ;;  %s1984_s21 = smov 72   ;;  %s1985_s22 = smov 120   ;;  %vm586_vm10 = vcmask 195584  }
   0xf   :  { %s1986_s0 = smov 104   ;;  %s1987_s26 = smov 64  }
  0x10   :  { %137 = vmatpush.msra.mxu0 %v112_v27  ;;  %s1988_s27 = smov 56   ;;  %s1989_s28 = smov 40  }
  0x11   :  { %s1990_s29 = smov 48   ;;  %s1991_s30 = smov 8  }
  0x12   :  { %58 = vadd.xlane.f32.xlu0 %v57_v7  ;;  %v1835_v9 = vpop.eup %1834  ;;  %138 = vmatpush.msra.mxu0 %v111_v28  ;;  %s2649_s11 = smov 24   ;;  %s2651_s12 = smov 16  }
  0x13   :  { %v61_v10 = vmul.f32 32.0, %v1835_v9  ;;  %vm65_vm1 = vweird.f32 %v1835_v9  ;;  %s1754_s16 = sld [smem:[#allocation4 + $0x1]] }
  0x14   :  { %s1600_s23 = sld [smem:[#allocation4]] }
  0x15   :  { %v62_v11 = vsub.f32 1.0, %v61_v10 }
  0x17   :  { %v63_v12 = vmul.f32 %v1835_v9, %v62_v11 }
  0x19   :  { %v64_v13 = vadd.f32 %v1835_v9, %v63_v12 }
  0x1a   :  { %s1601_s1 = scalar_lea.vmem [#allocation2], %s1600_s23 }
  0x1b   :  { %v2073_v14 = vsel %vm65_vm1, %v1835_v9, %v64_v13 }
  0x7d   :  { %v56_v15 = vpop.xlane.xlu0 %55 }
  0x7e   :  { %v67_v16 = vmul.f32 %v2073_v14, %v56_v15 }
  0x80   :  { %v69_v17 = vsub.f32 %v2062_v3, %v67_v16 }
  0x82   :  { %v71_v18 = vmul.f32 %v69_v17, %v69_v17 }
  0x84   :  { %v73_v19 = vsel %vm53_vm0, %v71_v18, 0.0  ;;  %v2143_v18 = vld [vmem:[%s2640_s2] sm:$0xff] }
  0x85   :  { %74 = vadd.xlane.f32.xlu1 %v73_v19  ;;  %v59_v20 = vpop.xlane.xlu0 %58 }
  0x86   :  { %v68_v21 = vmul.f32 %v2073_v14, %v59_v20 }
  0x88   :  { %v70_v22 = vsub.f32 %v2069_v6, %v68_v21 }
  0x8a   :  { %v72_v23 = vmul.f32 %v70_v22, %v70_v22 }
  0x8c   :  { %v76_v24 = vsel %vm53_vm0, %v72_v23, 0.0 }
  0x8d   :  { %77 = vadd.xlane.f32.xlu1 %v76_v24 }
  0xf8   :  { %v75_v29 = vpop.xlane.xlu1 %74 }
  0xf9   :  { %v79_v30 = vmul.f32 %v75_v29, %v2073_v14 }
  0xfb   :  { %v81_v31 = vadd.f32 1e-05, %v79_v30 }
  0xfd   :  { %1836 = vrsqrt.f32 %v81_v31  ;;  %vm89_vm3 = vweird.f32 %v81_v31 }
 0x100   :  { %v78_v32 = vpop.xlane.xlu1 %77 }
 0x101   :  { %v80_v33 = vmul.f32 %v78_v32, %v2073_v14 }
 0x103   :  { %v1837_v34 = vpop.eup %1836  ;;  %v82_v35 = vadd.f32 1e-05, %v80_v33 }
 0x104   :  { %v84_v36 = vmul.f32 %v1837_v34, %v81_v31  ;;  %vm90_vm2 = vweird.f32 %v1837_v34 }
 0x105   :  { %1838 = vrsqrt.f32 %v82_v35  ;;  %vm91_vm4 = vmor %vm89_vm3, %vm90_vm2  ;;  %vm99_vm6 = vweird.f32 %v82_v35 }
 0x106   :  { %v85_v37 = vmul.f32 %v1837_v34, %v84_v36 }
 0x108   :  { %v86_v38 = vmul.f32 0.5, %v85_v37 }
 0x10a   :  { %v87_v39 = vsub.f32 1.5, %v86_v38 }
 0x10b   :  { %v1839_v40 = vpop.eup %1838 }
 0x10c   :  { %v88_v41 = vmul.f32 %v1837_v34, %v87_v39  ;;  %v94_v42 = vmul.f32 %v1839_v40, %v82_v35  ;;  %vm100_vm5 = vweird.f32 %v1839_v40 }
 0x10d   :  { %vm101_vm7 = vmor %vm99_vm6, %vm100_vm5 }
 0x10e   :  { %v92_v44 = vsel %vm91_vm4, %v1837_v34, %v88_v41  ;;  %v95_v45 = vmul.f32 %v1839_v40, %v94_v42 }
 0x10f   :  { %v103_v46 = vmul.f32 %v92_v44, %v69_v17 }
 0x110   :  { %v96_v48 = vmul.f32 0.5, %v95_v45 }
 0x111   :  { %v106_v49 = vmul.f32 %v1816_v43, %v103_v46 }
 0x112   :  { %v97_v50 = vsub.f32 1.5, %v96_v48 }
 0x113   :  { %v109_v51 = vadd.f32 %v1817_v47, %v106_v49 }
 0x114   :  { %v98_v52 = vmul.f32 %v1839_v40, %v97_v50 }
 0x115   :  { %1662 = vmatmul.msk.f32.vlgmr.msra.gmra.mxu0 %vm53_vm0, %v109_v51 }
 0x116   :  { %v102_v53 = vsel %vm101_vm7, %v1839_v40, %v98_v52 }
 0x117   :  { %v104_v54 = vmul.f32 %v102_v53, %v70_v22  ;;  %v2150_v22 = vld [vmem:[%s2640_s2 + $0x8] sm:$0xff] }
 0x119   :  { %v107_v55 = vmul.f32 %v1816_v43, %v104_v54 }
 0x11b   :  { %v110_v56 = vadd.f32 %v1817_v47, %v107_v55 }
 0x11d   :  { %1663 = vmatmul.msk.f32.gmra.mxu0 %vm53_vm0, %v110_v56 }
 0x192   :  { %v140_v58 = vpop.f32.mrf.mxu0 }
 0x193   :  { %v141_v59 = vadd.f32 %v1818_v57, %v140_v58 }
 0x195   :  { %150 = vrot.lane.b32.xlu2 %v141_v59, %s1980_s17  ;;  %256 = vrot.lane.b32.xlu1 %v141_v59, %s1981_s18  ;;  %v146_v63 = vmul.f32 0.35355338, %v141_v59 }
 0x19a   :  { %v143_v60 = vpop.f32.mrf.mxu0 }
 0x19b   :  { %v144_v61 = vadd.f32 %v1818_v57, %v143_v60 }
 0x19d   :  { %360 = vrot.lane.b32.xlu1 %v144_v61, %s1982_s19  ;;  %258 = vrot.lane.b32.xlu0 %v144_v61, %s1981_s18  ;;  %v2110_v62 = vpack.i.bf16 %v141_v59, %v144_v61  ;;  %v147_v0 = vmul.f32 0.35355338, %v144_v61 }
 0x19e   :  { %152 = vrot.lane.b32.xlu2 %v144_v61, %s1980_s17 }
 0x1a5   :  { %354 = vrot.lane.b32.xlu1 %v146_v63, %s1983_s20  ;;  %460 = vrot.lane.b32.xlu0 %v141_v59, %s1984_s21 }
 0x1a6   :  { %252 = vrot.lane.b32.xlu2 %v146_v63, %s1985_s22 }
 0x1ad   :  { %358 = vrot.lane.b32.xlu0 %v141_v59, %s1982_s19 }
 0x1ae   :  { %462 = vrot.lane.b32.xlu2 %v144_v61, %s1984_s21 }
 0x1b5   :  { %356 = vrot.lane.b32.xlu0 %v147_v0, %s1983_s20 }
 0x1b6   :  { %254 = vrot.lane.b32.xlu2 %v147_v0, %s1985_s22 }
 0x1be   :  { %456 = vrot.lane.b32.xlu2 %v146_v63, %s1986_s0 }
 0x1c6   :  { %458 = vrot.lane.b32.xlu2 %v147_v0, %s1986_s0 }
 0x1ef   :  { %v151_v1 = vpop.permute.xlu2 %150 }
 0x1f8   :  { %v153_v2 = vpop.permute.xlu2 %152 }
 0x1f9   :  { %1664 = vmatpush.xpose.msk.msra.mxu1 %vm154_vm8, %v153_v2  ;;  %1757 = vmatpush.xpose.msk.msra.mxu3 %vm154_vm8, %v153_v2 }
 0x1fd   :  { %1665 = vmatpush.xpose.msk.msra.mxu1 %vm154_vm8, %v151_v1  ;;  %1758 = vmatpush.xpose.msk.msra.mxu3 %vm154_vm8, %v151_v1 }
 0x200   :  { %1666 = vmatmul.msk.f32.vlgmr.msra.gmra.mxu1 %vm154_vm8, %v146_v63  ;;  %1667 = vmatmul.msk.f32.vlgmr.msra.gmra.mxu3 %vm154_vm8, %v147_v0  ;;  %v253_v4 = vpop.permute.xlu2 %252 }
 0x207   :  { %v257_v5 = vpop.permute.xlu1 %256 }
 0x208   :  { %v463_v9 = vpop.permute.xlu2 %462 }
 0x20f   :  { %v259_v7 = vpop.permute.xlu0 %258  ;;  %v361_v8 = vpop.permute.xlu1 %360 }
 0x210   :  { %1670 = vmatpush.xpose.msk.msrb.mxu3 %vm154_vm8, %v259_v7  ;;  %1676 = vmatpush.xpose.msk.msrb.mxu0 %vm154_vm8, %v361_v8  ;;  %v255_v11 = vpop.permute.xlu2 %254 }
 0x214   :  { %1671 = vmatpush.xpose.msk.msrb.mxu3 %vm154_vm8, %v257_v5 }
 0x217   :  { %v461_v10 = vpop.permute.xlu0 %460  ;;  %1672 = vmatmul.msk.f32.vlgmr.msrb.gmra.mxu3 %vm154_vm8, %v253_v4  ;;  %v355_v13 = vpop.permute.xlu1 %354 }
 0x218   :  { %1682 = vmatpush.xpose.msk.msra.mxu3 %vm154_vm8, %v463_v9  ;;  %v457_v15 = vpop.permute.xlu2 %456 }
 0x21c   :  { %1683 = vmatpush.xpose.msk.msra.mxu3 %vm154_vm8, %v461_v10 }
 0x21f   :  { %v359_v12 = vpop.permute.xlu0 %358  ;;  %1673 = vmatmul.msk.f32.gmra.mxu3 %vm154_vm8, %v255_v11 }
 0x220   :  { %1677 = vmatpush.xpose.msk.msrb.mxu0 %vm154_vm8, %v359_v12  ;;  %v459_v17 = vpop.permute.xlu2 %458 }
 0x223   :  { %1678 = vmatmul.msk.f32.vlgmr.msrb.gmra.mxu0 %vm154_vm8, %v355_v13 }
 0x227   :  { %1684 = vmatmul.msk.f32.vlgmr.msra.gmra.mxu3 %vm154_vm8, %v457_v15  ;;  %v357_v16 = vpop.permute.xlu0 %356 }
 0x22b   :  { %1679 = vmatmul.msk.f32.gmra.mxu0 %vm154_vm8, %v357_v16 }
 0x22f   :  { %1685 = vmatmul.msk.f32.gmra.mxu3 %vm154_vm8, %v459_v17 }
 0x27d   :  { %v182_v19 = vpop.f32.mrf.mxu1 }
 0x27e   :  { %v183_v20 = vadd.f32 %v182_v19, %v2143_v18 }
 0x280   :  { %v189_v21 = vsel %vm188_vm9, %v183_v20, -inf }
 0x281   :  { %190 = vmax.xlane.f32.xlu1 %v189_v21 }
 0x283   :  { %v185_v23 = vpop.f32.mrf.mxu3 }
 0x284   :  { %v186_v24 = vadd.f32 %v185_v23, %v2150_v22 }
 0x286   :  { %v192_v25 = vsel %vm188_vm9, %v186_v24, -inf }
 0x287   :  { %193 = vmax.xlane.f32.xlu2 %v192_v25 }
 0x29a   :  { %v285_v26 = vpop.f32.mrf.mxu3 }
 0x29b   :  { %v286_v27 = vadd.f32 %v285_v26, %v2143_v18 }
 0x29d   :  { %v291_v28 = vsel %vm188_vm9, %v286_v27, -inf }
 0x29e   :  { %292 = vmax.xlane.f32.xlu2 %v291_v28 }
 0x2a0   :  { %v387_v29 = vpop.f32.mrf.mxu0 }
 0x2a1   :  { %v388_v30 = vadd.f32 %v387_v29, %v2143_v18 }
 0x2a2   :  { %v288_v31 = vpop.f32.mrf.mxu3 }
 0x2a3   :  { %v393_v32 = vsel %vm188_vm9, %v388_v30, -inf  ;;  %v289_v33 = vadd.f32 %v288_v31, %v2150_v22 }
 0x2a4   :  { %394 = vmax.xlane.f32.xlu0 %v393_v32 }
 0x2a5   :  { %v294_v38 = vsel %vm188_vm9, %v289_v33, -inf }
 0x2a8   :  { %v390_v34 = vpop.f32.mrf.mxu0 }
 0x2a9   :  { %v2160_v35 = vadd.f32 %v390_v34, %v2150_v22 }
 0x2aa   :  { %v489_v36 = vpop.f32.mrf.mxu3 }
 0x2ab   :  { %v396_v37 = vsel %vm188_vm9, %v2160_v35, -inf  ;;  %v490_v39 = vadd.f32 %v489_v36, %v2143_v18 }
 0x2ac   :  { %397 = vmax.xlane.f32.xlu1 %v396_v37  ;;  %295 = vmax.xlane.f32.xlu0 %v294_v38 }
 0x2ad   :  { %v495_v42 = vsel %vm188_vm9, %v490_v39, -inf }
 0x2b2   :  { %v492_v40 = vpop.f32.mrf.mxu3 }
 0x2b3   :  { %v493_v41 = vadd.f32 %v492_v40, %v2150_v22 }
 0x2b4   :  { %496 = vmax.xlane.f32.xlu1 %v495_v42 }
 0x2b5   :  { %v498_v43 = vsel %vm188_vm9, %v493_v41, -inf }
 0x2b6   :  { %499 = vmax.xlane.f32.xlu2 %v498_v43 }
 0x2c0   :  { %1782 = vrot.lane.b32.xlu0 %v2110_v62, %s1987_s26 }
 0x2f4   :  { %v191_v44 = vpop.xlane.xlu1 %190 }
 0x2f5   :  { %v195_v45 = vsub.f32 %v183_v20, %v191_v44 }
 0x2f7   :  { %v197_v46 = vmul.f32 1.442695, %v195_v45 }
 0x2f9   :  { %1840 = vpow2.f32 %v197_v46 }
 0x2fa   :  { %v194_v47 = vpop.xlane.xlu2 %193 }
 0x2fb   :  { %v196_v48 = vsub.f32 %v186_v24, %v194_v47 }
 0x2fd   :  { %v199_v49 = vmul.f32 1.442695, %v196_v48 }
 0x2ff   :  { %v2171_v50 = vpop.eup %1840  ;;  %1842 = vpow2.f32 %v199_v49 }
 0x300   :  { %v201_v51 = vsel %vm188_vm9, %v2171_v50, 0.0 }
 0x301   :  { %202 = vadd.xlane.f32.xlu2 %v201_v51 }
 0x305   :  { %v2175_v52 = vpop.eup %1842 }
 0x306   :  { %v204_v53 = vsel %vm188_vm9, %v2175_v52, 0.0 }
 0x307   :  { %205 = vadd.xlane.f32.xlu0 %v204_v53 }
 0x311   :  { %v293_v54 = vpop.xlane.xlu2 %292 }
 0x312   :  { %v297_v55 = vsub.f32 %v286_v27, %v293_v54 }
 0x314   :  { %v299_v56 = vmul.f32 1.442695, %v297_v55 }
 0x316   :  { %1844 = vpow2.f32 %v299_v56 }
 0x317   :  { %v395_v57 = vpop.xlane.xlu0 %394 }
 0x318   :  { %v399_v58 = vsub.f32 %v388_v30, %v395_v57 }
 0x319   :  { %1777 = vrot.lane.b32.xlu2 %v2110_v62, %s1988_s27 }
 0x31a   :  { %v401_v59 = vmul.f32 1.442695, %v399_v58 }
 0x31c   :  { %v2181_v60 = vpop.eup %1844  ;;  %1846 = vpow2.f32 %v401_v59 }
 0x31d   :  { %v303_v61 = vsel %vm188_vm9, %v2181_v60, 0.0 }
 0x31e   :  { %304 = vadd.xlane.f32.xlu0 %v303_v61 }
 0x31f   :  { %v296_v63 = vpop.xlane.xlu0 %295  ;;  %v398_v0 = vpop.xlane.xlu1 %397 }
 0x320   :  { %v298_v1 = vsub.f32 %v289_v33, %v296_v63  ;;  %v400_v16 = vsub.f32 %v2160_v35, %v398_v0 }
 0x322   :  { %v2185_v2 = vpop.eup %1846  ;;  %v301_v4 = vmul.f32 1.442695, %v298_v1  ;;  %v403_v23 = vmul.f32 1.442695, %v400_v16 }
 0x323   :  { %v405_v5 = vsel %vm188_vm9, %v2185_v2, 0.0 }
 0x324   :  { %1848 = vpow2.f32 %v301_v4  ;;  %406 = vadd.xlane.f32.xlu1 %v405_v5 }
 0x327   :  { %v497_v7 = vpop.xlane.xlu1 %496 }
 0x328   :  { %v501_v8 = vsub.f32 %v490_v39, %v497_v7 }
 0x329   :  { %v500_v9 = vpop.xlane.xlu2 %499 }
 0x32a   :  { %v2189_v10 = vpop.eup %1848  ;;  %v503_v11 = vmul.f32 1.442695, %v501_v8  ;;  %v502_v12 = vsub.f32 %v493_v41, %v500_v9 }
 0x32b   :  { %v306_v13 = vsel %vm188_vm9, %v2189_v10, 0.0 }
 0x32c   :  { %1850 = vpow2.f32 %v503_v11  ;;  %307 = vadd.xlane.f32.xlu1 %v306_v13  ;;  %v505_v15 = vmul.f32 1.442695, %v502_v12 }
 0x32e   :  { %1852 = vpow2.f32 %v505_v15 }
 0x32f   :  { %1854 = vpow2.f32 %v403_v23 }
 0x332   :  { %v2194_v17 = vpop.eup %1850  ;;  %1787 = vrot.lane.b32.xlu0 %v2110_v62, %s1989_s28  ;;  %v1783_v19 = vpop.permute.xlu0 %1782 }
 0x333   :  { %v507_v20 = vsel %vm188_vm9, %v2194_v17, 0.0  ;;  %v1784_v21 = vunpack.i.l.bf16 %v1783_v19  ;;  %v1785_v24 = vunpack.i.h.bf16 %v1783_v19 }
 0x334   :  { %508 = vadd.xlane.f32.xlu1 %v507_v20  ;;  %v2200_v25 = vpop.eup %1852 }
 0x335   :  { %243 = vmatpush.msrb.mxu1 %v1784_v21  ;;  %v510_v26 = vsel %vm188_vm9, %v2200_v25, 0.0  ;;  %v2204_v27 = vpop.eup %1854 }
 0x336   :  { %v408_v28 = vsel %vm188_vm9, %v2204_v27, 0.0 }
 0x337   :  { %244 = vmatpush.msrb.mxu1 %v1785_v24 }
 0x33c   :  { %511 = vadd.xlane.f32.xlu1 %v510_v26 }
 0x342   :  { %409 = vadd.xlane.f32.xlu2 %v408_v28 }
 0x355   :  { %1792 = vrot.lane.b32.xlu1 %v2110_v62, %s1990_s29 }
 0x374   :  { %v203_v29 = vpop.xlane.xlu2 %202 }
 0x375   :  { %1856 = vrcp.f32 %v203_v29 }
 0x37a   :  { %v206_v30 = vpop.xlane.xlu0 %205 }
 0x37b   :  { %v1857_v31 = vpop.eup %1856  ;;  %1858 = vrcp.f32 %v206_v30 }
 0x37c   :  { %v209_v32 = vmul.f32 %v1857_v31, %v203_v29  ;;  %v1778_v33 = vpop.permute.xlu2 %1777 }
 0x37d   :  { %v1779_v34 = vunpack.i.l.bf16 %v1778_v33  ;;  %v1780_v36 = vunpack.i.h.bf16 %v1778_v33 }
 0x37e   :  { %v211_v35 = vsub.f32 2.0, %v209_v32 }
 0x37f   :  { %345 = vmatpush.msra.mxu2 %v1779_v34 }
 0x380   :  { %v213_v37 = vmul.f32 %v1857_v31, %v211_v35  ;;  %v592_v35 = vld [vmem:[%s2644_s6 + $0x18] sm:$0xff] }
 0x381   :  { %v1859_v38 = vpop.eup %1858  ;;  %346 = vmatpush.msra.mxu2 %v1780_v36  ;;  %v591_v36 = vld [vmem:[%s2644_s6 + $0x10] sm:$0xff]  ;;  %611 = vmatpush.msra.mxu0 %v592_v35 }
 0x382   :  { %v215_v39 = vmul.f32 %v2171_v50, %v213_v37  ;;  %v210_v40 = vmul.f32 %v1859_v38, %v206_v30  ;;  %v590_v37 = vld [vmem:[%s2644_s6 + $0x8] sm:$0xff] }
 0x383   :  { %612 = vmatpush.msra.mxu0 %v591_v36 }
 0x384   :  { %v212_v41 = vsub.f32 2.0, %v210_v40  ;;  %1668 = vmatmul.msk.f32.vlgmr.msrb.gmra.mxu1 %vm188_vm9, %v215_v39 }
 0x385   :  { %613 = vmatpush.msra.mxu0 %v590_v37 }
 0x386   :  { %v214_v62 = vmul.f32 %v1859_v38, %v212_v41  ;;  %v589_v38 = vld [vmem:[%s2644_s6] sm:$0xff] }
 0x387   :  { %614 = vmatpush.msra.mxu0 %v589_v38 }
 0x388   :  { %v216_v42 = vmul.f32 %v2175_v52, %v214_v62 }
 0x38c   :  { %1669 = vmatmul.msk.f32.gmra.mxu1 %vm188_vm9, %v216_v42 }
 0x391   :  { %v305_v43 = vpop.xlane.xlu0 %304 }
 0x392   :  { %1860 = vrcp.f32 %v305_v43 }
 0x397   :  { %v407_v44 = vpop.xlane.xlu1 %406 }
 0x398   :  { %v1861_v45 = vpop.eup %1860 }
 0x399   :  { %v311_v46 = vmul.f32 %v1861_v45, %v305_v43 }
 0x39b   :  { %v313_v47 = vsub.f32 2.0, %v311_v46 }
 0x39d   :  { %v315_v48 = vmul.f32 %v1861_v45, %v313_v47 }
 0x39f   :  { %v308_v49 = vpop.xlane.xlu1 %307  ;;  %v317_v51 = vmul.f32 %v2181_v60, %v315_v48 }
 0x3a0   :  { %1862 = vrcp.f32 %v308_v49 }
 0x3a1   :  { %1674 = vmatmul.msk.f32.vlgmr.msra.gmra.mxu2 %vm188_vm9, %v317_v51  ;;  %v1819_v51 = vld [vmem:[%s2641_s3 + $0x4] ss:$0 sm:$0xff] }
 0x3a4   :  { %v1788_v50 = vpop.permute.xlu0 %1787 }
 0x3a5   :  { %v1789_v53 = vunpack.i.l.bf16 %v1788_v50  ;;  %v1790_v56 = vunpack.i.h.bf16 %v1788_v50 }
 0x3a6   :  { %v1863_v54 = vpop.eup %1862 }
 0x3a7   :  { %v312_v55 = vmul.f32 %v1863_v54, %v308_v49  ;;  %549 = vmatpush.msrb.mxu2 %v1789_v53  ;;  %v509_v52 = vpop.xlane.xlu1 %508 }
 0x3a8   :  { %1864 = vrcp.f32 %v509_v52 }
 0x3a9   :  { %v314_v57 = vsub.f32 2.0, %v312_v55  ;;  %550 = vmatpush.msrb.mxu2 %v1790_v56 }
 0x3ab   :  { %v316_v58 = vmul.f32 %v1863_v54, %v314_v57 }
 0x3ad   :  { %v318_v59 = vmul.f32 %v2189_v10, %v316_v58 }
 0x3ae   :  { %v1865_v61 = vpop.eup %1864 }
 0x3af   :  { %v515_v63 = vmul.f32 %v1865_v61, %v509_v52  ;;  %1675 = vmatmul.msk.f32.gmra.mxu2 %vm188_vm9, %v318_v59  ;;  %v512_v60 = vpop.xlane.xlu1 %511 }
 0x3b0   :  { %1866 = vrcp.f32 %v512_v60 }
 0x3b1   :  { %v517_v0 = vsub.f32 2.0, %v515_v63  ;;  %1868 = vrcp.f32 %v407_v44 }
 0x3b3   :  { %v519_v1 = vmul.f32 %v1865_v61, %v517_v0 }
 0x3b5   :  { %v521_v4 = vmul.f32 %v2194_v17, %v519_v1  ;;  %v410_v11 = vpop.xlane.xlu2 %409 }
 0x3b6   :  { %v1867_v5 = vpop.eup %1866  ;;  %1870 = vrcp.f32 %v410_v11 }
 0x3b7   :  { %v516_v7 = vmul.f32 %v1867_v5, %v512_v60  ;;  %1686 = vmatmul.msk.f32.vlgmr.msrb.gmra.mxu2 %vm188_vm9, %v521_v4  ;;  %v1869_v12 = vpop.eup %1868 }
 0x3b8   :  { %v413_v13 = vmul.f32 %v1869_v12, %v407_v44 }
 0x3b9   :  { %v518_v8 = vsub.f32 2.0, %v516_v7  ;;  %v683_v7 = vld [vmem:[%s2645_s7 + $0x18] sm:$0xff] }
 0x3ba   :  { %v415_v15 = vsub.f32 2.0, %v413_v13 }
 0x3bb   :  { %v520_v9 = vmul.f32 %v1867_v5, %v518_v8  ;;  %v682_v8 = vld [vmem:[%s2645_s7 + $0x10] sm:$0xff] }
 0x3bc   :  { %v1871_v16 = vpop.eup %1870  ;;  %v417_v19 = vmul.f32 %v1869_v12, %v415_v15 }
 0x3bd   :  { %v522_v10 = vmul.f32 %v2200_v25, %v520_v9  ;;  %v414_v20 = vmul.f32 %v1871_v16, %v410_v11  ;;  %v681_v9 = vld [vmem:[%s2645_s7 + $0x8] sm:$0xff]  ;;  %v680_v11 = vld [vmem:[%s2645_s7] sm:$0xff] }
 0x3be   :  { %v419_v24 = vmul.f32 %v2185_v2, %v417_v19 }
 0x3bf   :  { %1687 = vmatmul.msk.f32.gmra.mxu2 %vm188_vm9, %v522_v10  ;;  %v416_v26 = vsub.f32 2.0, %v414_v20 }
 0x3c1   :  { %v418_v28 = vmul.f32 %v1871_v16, %v416_v26 }
 0x3c3   :  { %v420_v25 = vmul.f32 %v2204_v27, %v418_v28 }
 0x3c7   :  { %v1793_v17 = vpop.permute.xlu1 %1792 }
 0x3c8   :  { %v1794_v21 = vunpack.i.l.bf16 %v1793_v17  ;;  %v1795_v23 = vunpack.i.h.bf16 %v1793_v17 }
 0x3ca   :  { %447 = vmatpush.msra.mxu1 %v1794_v21 }
 0x3cc   :  { %448 = vmatpush.msra.mxu1 %v1795_v23 }
 0x3cd   :  { %1680 = vmatmul.msk.f32.vlgmr.msra.gmra.mxu1 %vm188_vm9, %v419_v24 }
 0x3ce   :  { %704 = vmatpush.msrb.mxu1 %v683_v7 }
 0x3d0   :  { %705 = vmatpush.msrb.mxu1 %v682_v8 }
 0x3d2   :  { %706 = vmatpush.msrb.mxu1 %v681_v9 }
 0x3d4   :  { %707 = vmatpush.msrb.mxu1 %v680_v11 }
 0x3d5   :  { %1681 = vmatmul.msk.f32.gmra.mxu1 %vm188_vm9, %v420_v25  ;;  %v1820_v25 = vld [vmem:[%s2641_s3 + $0x2] ss:$0 sm:$0xff] }
 0x401   :  { %v246_v31 = vpop.f32.mrf.mxu1 }
 0x409   :  { %v249_v33 = vpop.f32.mrf.mxu1 }
 0x424   :  { %v348_v29 = vpop.f32.mrf.mxu2 }
 0x432   :  { %v351_v30 = vpop.f32.mrf.mxu2 }
 0x433   :  { %562 = vrot.lane.b32.xlu1 %v351_v30, %s1991_s30 }
 0x43a   :  { %v552_v32 = vpop.f32.mrf.mxu2 }
 0x442   :  { %v555_v34 = vpop.f32.mrf.mxu2 }
 0x443   :  { %578 = vrot.lane.b32.xlu1 %v555_v34, %s2649_s11 }
 0x44a   :  { %v450_v2 = vpop.f32.mrf.mxu1 }
 0x44b   :  { %568 = vrot.lane.b32.xlu0 %v450_v2, %s2651_s12 }
 0x452   :  { %v453_v27 = vpop.f32.mrf.mxu1 }
 0x453   :  { %560 = vrot.lane.b32.xlu0 %v348_v29, %s1991_s30 }
 0x45b   :  { %576 = vrot.lane.b32.xlu0 %v552_v32, %s2649_s11 }
 0x463   :  { %570 = vrot.lane.b32.xlu0 %v453_v27, %s2651_s12 }
 0x4a5   :  { %v563_v43 = vpop.permute.xlu1 %562 }
 0x4a6   :  { %v583_v45 = vsel %vm154_vm8, %v249_v33, %v563_v43  ;;  %v1821_v33 = vld [vmem:[%s2641_s3 + $0x3] ss:$0 sm:$0xff] }
 0x4a7   :  { %v769_v43 = vld [vmem:[%s2646_s8 + $0x60] sm:$0xff] }
 0x4b5   :  { %v579_v47 = vpop.permute.xlu1 %578 }
 0x4bd   :  { %v569_v39 = vpop.permute.xlu0 %568 }
 0x4c5   :  { %v561_v40 = vpop.permute.xlu0 %560 }
 0x4c6   :  { %v582_v41 = vsel %vm154_vm8, %v246_v31, %v561_v40 }
 0x4c7   :  { %v584_v62 = vsel %vm188_vm9, %v582_v41, %v569_v39  ;;  %v772_v41 = vld [vmem:[%s2646_s8 + $0x78] sm:$0xff] }
 0x4c8   :  { %773 = vmatpush.msrb.mxu3 %v772_v41 }
 0x4cd   :  { %v577_v42 = vpop.permute.xlu0 %576 }
 0x4ce   :  { %v587_v44 = vsel %vm586_vm10, %v584_v62, %v577_v42  ;;  %v771_v62 = vld [vmem:[%s2646_s8 + $0x70] sm:$0xff]  ;;  %v770_v42 = vld [vmem:[%s2646_s8 + $0x68] sm:$0xff] }
 0x4cf   :  { %1688 = vmatmul.msk.f32.vlgmr.msra.gmra.mxu0 %vm53_vm0, %v587_v44  ;;  %774 = vmatpush.msrb.mxu3 %v771_v62  ;;  %v768_v44 = vld [vmem:[%s2646_s8 + $0x58] sm:$0xff] }
 0x4d1   :  { %775 = vmatpush.msrb.mxu3 %v770_v42 }
 0x4d3   :  { %776 = vmatpush.msrb.mxu3 %v769_v43 }
 0x4d5   :  { %v571_v46 = vpop.permute.xlu0 %570  ;;  %777 = vmatpush.msrb.mxu3 %v768_v44 }
 0x4d6   :  { %v585_v48 = vsel %vm188_vm9, %v583_v45, %v571_v46  ;;  %v767_v45 = vld [vmem:[%s2646_s8 + $0x50] sm:$0xff]  ;;  %v766_v46 = vld [vmem:[%s2646_s8 + $0x48] sm:$0xff] }
 0x4d7   :  { %v588_v49 = vsel %vm586_vm10, %v585_v48, %v579_v47  ;;  %778 = vmatpush.msrb.mxu3 %v767_v45  ;;  %v765_v47 = vld [vmem:[%s2646_s8 + $0x40] sm:$0xff]  ;;  %v764_v48 = vld [vmem:[%s2646_s8 + $0x38] sm:$0xff] }
 0x4d8   :  { %1689 = vmatmul.msk.f32.gmra.mxu0 %vm53_vm0, %v588_v49  ;;  %v763_v49 = vld [vmem:[%s2646_s8 + $0x30] sm:$0xff] }
 0x4d9   :  { %779 = vmatpush.msrb.mxu3 %v766_v46 }
 0x4db   :  { %780 = vmatpush.msrb.mxu3 %v765_v47 }
 0x4dd   :  { %781 = vmatpush.msrb.mxu3 %v764_v48 }
 0x4df   :  { %782 = vmatpush.msrb.mxu3 %v763_v49  ;;  %v1697_v49 = vld [vmem:[%s2643_s5 + $0x38] sm:$0xff] }
 0x4e0   :  { %879 = vmatpush.msra.mxu2 %v1697_v49 }
 0x54c   :  { %v616_v50 = vpop.f32.mrf.mxu0 }
 0x54d   :  { %v622_v53 = vadd.f32 %v616_v50, %v2062_v3  ;;  %v761_v50 = vld [vmem:[%s2646_s8 + $0x20] sm:$0xff] }
 0x54f   :  { %v2256_v54 = vadd.f32 %v1819_v51, %v622_v53  ;;  %v760_v53 = vld [vmem:[%s2646_s8 + $0x18] sm:$0xff] }
 0x551   :  { %v630_v55 = vsel %vm53_vm0, %v2256_v54, 0.0 }
 0x552   :  { %631 = vadd.xlane.f32.xlu0 %v630_v55  ;;  %v1822_v55 = vld [vmem:[%s2642_s4] ss:$0 sm:$0xff] }
 0x555   :  { %v619_v52 = vpop.f32.mrf.mxu0 }
 0x556   :  { %v623_v56 = vadd.f32 %v619_v52, %v2069_v6  ;;  %v759_v52 = vld [vmem:[%s2646_s8 + $0x10] sm:$0xff] }
 0x558   :  { %v2261_v57 = vadd.f32 %v1819_v51, %v623_v56  ;;  %v762_v51 = vld [vmem:[%s2646_s8 + $0x28] sm:$0xff] }
 0x559   :  { %783 = vmatpush.msrb.mxu3 %v762_v51  ;;  %v1696_v51 = vld [vmem:[%s2643_s5 + $0x30] sm:$0xff] }
 0x55a   :  { %v633_v58 = vsel %vm53_vm0, %v2261_v57, 0.0  ;;  %880 = vmatpush.msra.mxu2 %v1696_v51 }
 0x55b   :  { %634 = vadd.xlane.f32.xlu2 %v633_v58  ;;  %784 = vmatpush.msrb.mxu3 %v761_v50  ;;  %v758_v58 = vld [vmem:[%s2646_s8 + $0x8] sm:$0xff] }
 0x55c   :  { %v1695_v50 = vld [vmem:[%s2643_s5 + $0x28] sm:$0xff] }
 0x55d   :  { %785 = vmatpush.msrb.mxu3 %v760_v53  ;;  %881 = vmatpush.msra.mxu2 %v1695_v50  ;;  %v1694_v53 = vld [vmem:[%s2643_s5 + $0x20] sm:$0xff] }
 0x55f   :  { %786 = vmatpush.msrb.mxu3 %v759_v52  ;;  %882 = vmatpush.msra.mxu2 %v1694_v53 }
 0x561   :  { %787 = vmatpush.msrb.mxu3 %v758_v58 }
 0x5c5   :  { %v632_v59 = vpop.xlane.xlu0 %631 }
 0x5c6   :  { %v636_v61 = vmul.f32 %v632_v59, %v2073_v14 }
 0x5c8   :  { %v638_v3 = vsub.f32 %v2256_v54, %v636_v61  ;;  %v757_v61 = vld [vmem:[%s2646_s8] sm:$0xff] }
 0x5c9   :  { %788 = vmatpush.msrb.mxu3 %v757_v61 }
 0x5ca   :  { %v640_v63 = vmul.f32 %v638_v3, %v638_v3 }
 0x5cc   :  { %v642_v60 = vsel %vm53_vm0, %v640_v63, 0.0 }
 0x5cd   :  { %643 = vadd.xlane.f32.xlu1 %v642_v60 }
 0x5ce   :  { %v635_v0 = vpop.xlane.xlu2 %634 }
 0x5cf   :  { %v637_v1 = vmul.f32 %v635_v0, %v2073_v14 }
 0x5d1   :  { %v639_v6 = vsub.f32 %v2261_v57, %v637_v1 }
 0x5d3   :  { %v641_v4 = vmul.f32 %v639_v6, %v639_v6 }
 0x5d5   :  { %v645_v5 = vsel %vm53_vm0, %v641_v4, 0.0 }
 0x5d6   :  { %646 = vadd.xlane.f32.xlu2 %v645_v5 }
 0x640   :  { %v644_v12 = vpop.xlane.xlu1 %643 }
 0x641   :  { %v648_v10 = vmul.f32 %v644_v12, %v2073_v14 }
 0x643   :  { %v650_v13 = vadd.f32 1e-05, %v648_v10 }
 0x645   :  { %1872 = vrsqrt.f32 %v650_v13  ;;  %vm658_vm12 = vweird.f32 %v650_v13 }
 0x649   :  { %v647_v15 = vpop.xlane.xlu2 %646 }
 0x64a   :  { %v649_v16 = vmul.f32 %v647_v15, %v2073_v14 }
 0x64b   :  { %v1873_v19 = vpop.eup %1872 }
 0x64c   :  { %v653_v20 = vmul.f32 %v1873_v19, %v650_v13  ;;  %v651_v17 = vadd.f32 1e-05, %v649_v16  ;;  %vm659_vm11 = vweird.f32 %v1873_v19 }
 0x64d   :  { %vm660_vm13 = vmor %vm658_vm12, %vm659_vm11 }
 0x64e   :  { %v654_v21 = vmul.f32 %v1873_v19, %v653_v20  ;;  %1874 = vrsqrt.f32 %v651_v17  ;;  %vm668_vm15 = vweird.f32 %v651_v17 }
 0x650   :  { %v655_v23 = vmul.f32 0.5, %v654_v21 }
 0x652   :  { %v656_v24 = vsub.f32 1.5, %v655_v23 }
 0x654   :  { %v1875_v26 = vpop.eup %1874  ;;  %v657_v28 = vmul.f32 %v1873_v19, %v656_v24 }
 0x655   :  { %v663_v29 = vmul.f32 %v1875_v26, %v651_v17  ;;  %vm669_vm14 = vweird.f32 %v1875_v26 }
 0x656   :  { %v661_v30 = vsel %vm660_vm13, %v1873_v19, %v657_v28  ;;  %vm670_vm1 = vmor %vm668_vm15, %vm669_vm14 }
 0x657   :  { %v672_v31 = vmul.f32 %v661_v30, %v638_v3  ;;  %v664_v32 = vmul.f32 %v1875_v26, %v663_v29 }
 0x659   :  { %v675_v34 = vmul.f32 %v1820_v25, %v672_v31  ;;  %v665_v2 = vmul.f32 0.5, %v664_v32 }
 0x65b   :  { %v666_v27 = vsub.f32 1.5, %v665_v2  ;;  %v678_v35 = vadd.f32 %v1821_v33, %v675_v34  ;;  %v1823_v2 = vld [vmem:[%s2641_s3 + $0x5] ss:$0 sm:$0xff] }
 0x65d   :  { %v667_v36 = vmul.f32 %v1875_v26, %v666_v27  ;;  %1690 = vmatmul.msk.f32.vlgmr.msrb.gmra.mxu1 %vm53_vm0, %v678_v35 }
 0x65f   :  { %v671_v37 = vsel %vm670_vm1, %v1875_v26, %v667_v36 }
 0x660   :  { %v673_v38 = vmul.f32 %v671_v37, %v639_v6 }
 0x662   :  { %v676_v39 = vmul.f32 %v1820_v25, %v673_v38 }
 0x664   :  { %v679_v40 = vadd.f32 %v1821_v33, %v676_v39 }
 0x666   :  { %1691 = vmatmul.msk.f32.gmra.mxu1 %vm53_vm0, %v679_v40 }
 0x6da   :  { %v709_v56 = vpop.f32.mrf.mxu1 }
 0x6db   :  { %v710_v59 = vadd.f32 %v1822_v55, %v709_v56 }
 0x6dd   :  { %v1692_v3 = vmul.f32 -1.702, %v710_v59 }
 0x6df   :  { %v719_v63 = vmul.f32 1.442695, %v1692_v3 }
 0x6e1   :  { %1876 = vpow2.f32 %v719_v63 }
 0x6e3   :  { %v712_v60 = vpop.f32.mrf.mxu1 }
 0x6e4   :  { %v713_v0 = vadd.f32 %v1822_v55, %v712_v60 }
 0x6e6   :  { %v1693_v1 = vmul.f32 -1.702, %v713_v0 }
 0x6e7   :  { %v1877_v6 = vpop.eup %1876 }
 0x6e8   :  { %v723_v4 = vadd.f32 1.0, %v1877_v6  ;;  %v721_v5 = vmul.f32 1.442695, %v1693_v1 }
 0x6ea   :  { %1878 = vrcp.f32 %v723_v4  ;;  %v736_v10 = vand.u32 2147483648, %v723_v4  ;;  %v734_v15 = vand.u32 2147483647, %v723_v4  ;;  %vm730_vm3 = vweird.f32 %v723_v4 }
 0x6eb   :  { %1880 = vpow2.f32 %v721_v5  ;;  %v1824_v5 = vld [vmem:[%s2641_s3 + $0x6] ss:$0 sm:$0xff] }
 0x6ec   :  { %v737_v19 = vor.u32 1.1754944e-38, %v736_v10  ;;  %vm735_vm5 = vcmp.eq.f32.partialorder %v734_v15, 8.507059e+37 }
 0x6f0   :  { %v1879_v7 = vpop.eup %1878 }
 0x6f1   :  { %v1881_v8 = vpop.eup %1880  ;;  %v726_v9 = vmul.f32 %v1879_v7, %v723_v4  ;;  %vm731_vm2 = vweird.f32 %v1879_v7 }
 0x6f2   :  { %v724_v11 = vadd.f32 1.0, %v1881_v8  ;;  %vm732_vm4 = vmor %vm730_vm3, %vm731_vm2 }
 0x6f3   :  { %v727_v12 = vsub.f32 1.0, %v726_v9 }
 0x6f4   :  { %1882 = vrcp.f32 %v724_v11  ;;  %v751_v28 = vand.u32 2147483648, %v724_v11  ;;  %v749_v29 = vand.u32 2147483647, %v724_v11  ;;  %vm745_vm7 = vweird.f32 %v724_v11 }
 0x6f5   :  { %v728_v13 = vmul.f32 %v1879_v7, %v727_v12 }
 0x6f6   :  { %v752_v31 = vor.u32 1.1754944e-38, %v751_v28  ;;  %vm750_vm12 = vcmp.eq.f32.partialorder %v749_v29, 8.507059e+37 }
 0x6f7   :  { %v729_v16 = vadd.f32 %v1879_v7, %v728_v13 }
 0x6f9   :  { %v733_v20 = vsel %vm732_vm4, %v1879_v7, %v729_v16 }
 0x6fa   :  { %v1883_v17 = vpop.eup %1882  ;;  %v738_v21 = vsel %vm735_vm5, %v737_v19, %v733_v20 }
 0x6fb   :  { %v755_v23 = vmul.f32 %v738_v21, %v710_v59  ;;  %v741_v24 = vmul.f32 %v1883_v17, %v724_v11  ;;  %vm746_vm6 = vweird.f32 %v1883_v17  ;;  %v1825_v11 = vld [vmem:[%s2641_s3 + $0x7] ss:$0 sm:$0xff] }
 0x6fc   :  { %vm747_vm11 = vmor %vm745_vm7, %vm746_vm6 }
 0x6fd   :  { %789 = vmatmul.f32.vlgmr.msrb.gmra.mxu3 %v755_v23  ;;  %v742_v26 = vsub.f32 1.0, %v741_v24  ;;  %v1826_v24 = vld [vmem:[%s2642_s4 + $0x3] ss:$0 sm:$0xff] }
 0x6ff   :  { %v743_v25 = vmul.f32 %v1883_v17, %v742_v26 }
 0x701   :  { %v744_v30 = vadd.f32 %v1883_v17, %v743_v25 }
 0x703   :  { %v748_v32 = vsel %vm747_vm11, %v1883_v17, %v744_v30 }
 0x704   :  { %v753_v33 = vsel %vm750_vm12, %v752_v31, %v748_v32 }
 0x705   :  { %v756_v34 = vmul.f32 %v753_v33, %v713_v0 }
 0x707   :  { %792 = vmatmul.f32.gmra.mxu3 %v756_v34 }
 0x780   :  { %v790_v27 = vpop.f32.mrf.mxu3 }
 0x781   :  { %v796_v35 = vadd.f32 %v790_v27, %v2256_v54 }
 0x783   :  { %v2348_v36 = vadd.f32 %v1823_v2, %v796_v35 }
 0x785   :  { %v804_v37 = vsel %vm53_vm0, %v2348_v36, 0.0 }
 0x786   :  { %805 = vadd.xlane.f32.xlu2 %v804_v37 }
 0x78a   :  { %v793_v38 = vpop.f32.mrf.mxu3 }
 0x78b   :  { %v797_v39 = vadd.f32 %v793_v38, %v2261_v57 }
 0x78d   :  { %v2353_v40 = vadd.f32 %v1823_v2, %v797_v39 }
 0x78f   :  { %v807_v41 = vsel %vm53_vm0, %v2353_v40, 0.0 }
 0x790   :  { %808 = vadd.xlane.f32.xlu2 %v807_v41 }
 0x7f9   :  { %v806_v62 = vpop.xlane.xlu2 %805 }
 0x7fa   :  { %v810_v42 = vmul.f32 %v806_v62, %v2073_v14 }
 0x7fc   :  { %v812_v54 = vsub.f32 %v2348_v36, %v810_v42 }
 0x7fe   :  { %v814_v43 = vmul.f32 %v812_v54, %v812_v54 }
 0x800   :  { %v816_v44 = vsel %vm53_vm0, %v814_v43, 0.0 }
 0x801   :  { %817 = vadd.xlane.f32.xlu2 %v816_v44 }
 0x803   :  { %v809_v45 = vpop.xlane.xlu2 %808 }
 0x804   :  { %v811_v46 = vmul.f32 %v809_v45, %v2073_v14 }
 0x806   :  { %v813_v57 = vsub.f32 %v2353_v40, %v811_v46 }
 0x808   :  { %v815_v47 = vmul.f32 %v813_v57, %v813_v57 }
 0x80a   :  { %v819_v48 = vsel %vm53_vm0, %v815_v47, 0.0 }
 0x80b   :  { %820 = vadd.xlane.f32.xlu2 %v819_v48 }
 0x874   :  { %v818_v55 = vpop.xlane.xlu2 %817 }
 0x875   :  { %v822_v52 = vmul.f32 %v818_v55, %v2073_v14 }
 0x877   :  { %v824_v56 = vadd.f32 1e-05, %v822_v52 }
 0x879   :  { %1884 = vrsqrt.f32 %v824_v56  ;;  %vm832_vm14 = vweird.f32 %v824_v56 }
 0x87e   :  { %v821_v58 = vpop.xlane.xlu2 %820 }
 0x87f   :  { %v1885_v59 = vpop.eup %1884  ;;  %v823_v61 = vmul.f32 %v821_v58, %v2073_v14 }
 0x880   :  { %v827_v3 = vmul.f32 %v1885_v59, %v824_v56  ;;  %vm833_vm13 = vweird.f32 %v1885_v59 }
 0x881   :  { %v825_v63 = vadd.f32 1e-05, %v823_v61  ;;  %vm834_vm15 = vmor %vm832_vm14, %vm833_vm13 }
 0x882   :  { %v828_v60 = vmul.f32 %v1885_v59, %v827_v3 }
 0x883   :  { %1886 = vrsqrt.f32 %v825_v63  ;;  %vm842_vm2 = vweird.f32 %v825_v63 }
 0x884   :  { %v829_v0 = vmul.f32 0.5, %v828_v60  ;;  %v1936_v60 = vld [vmem:[%s2640_s2] sm:$0xff] }
 0x886   :  { %v830_v1 = vsub.f32 1.5, %v829_v0 }
 0x888   :  { %v831_v6 = vmul.f32 %v1885_v59, %v830_v1 }
 0x889   :  { %v1887_v4 = vpop.eup %1886 }
 0x88a   :  { %v835_v7 = vsel %vm834_vm15, %v1885_v59, %v831_v6  ;;  %v837_v8 = vmul.f32 %v1887_v4, %v825_v63  ;;  %vm843_vm1 = vweird.f32 %v1887_v4 }
 0x88b   :  { %v846_v9 = vmul.f32 %v835_v7, %v812_v54  ;;  %vm844_vm3 = vmor %vm842_vm2, %vm843_vm1 }
 0x88c   :  { %v838_v12 = vmul.f32 %v1887_v4, %v837_v8 }
 0x88d   :  { %v849_v10 = vmul.f32 %v1824_v5, %v846_v9 }
 0x88e   :  { %v839_v13 = vmul.f32 0.5, %v838_v12 }
 0x88f   :  { %v852_v15 = vadd.f32 %v1825_v11, %v849_v10 }
 0x890   :  { %v840_v16 = vsub.f32 1.5, %v839_v13 }
 0x891   :  { %1698 = vmatmul.msk.f32.vlgmr.msra.gmra.mxu2 %vm53_vm0, %v852_v15 }
 0x892   :  { %v841_v19 = vmul.f32 %v1887_v4, %v840_v16 }
 0x894   :  { %v845_v20 = vsel %vm844_vm3, %v1887_v4, %v841_v19 }
 0x895   :  { %v847_v17 = vmul.f32 %v845_v20, %v813_v57 }
 0x897   :  { %v850_v21 = vmul.f32 %v1824_v5, %v847_v17 }
 0x899   :  { %v853_v23 = vadd.f32 %v1825_v11, %v850_v21 }
 0x89b   :  { %1699 = vmatmul.msk.f32.gmra.mxu2 %vm53_vm0, %v853_v23 }
 0x914   :  { %v884_v26 = vpop.f32.mrf.mxu2 }
 0x915   :  { %v2388_v28 = vadd.f32 %v1826_v24, %v884_v26 }
 0x917   :  { %894 = vrot.lane.b32.xlu1 %v2388_v28, %s1980_s17  ;;  %v890_v31 = vmul.f32 0.35355338, %v2388_v28 }
 0x91e   :  { %v887_v25 = vpop.f32.mrf.mxu2 }
 0x91f   :  { %v888_v29 = vadd.f32 %v1826_v24, %v887_v25  ;;  %998 = vrot.lane.b32.xlu1 %v2388_v28, %s1981_s18 }
 0x921   :  { %896 = vrot.lane.b32.xlu0 %v888_v29, %s1980_s17  ;;  %v2396_v30 = vpack.i.bf16 %v2388_v28, %v888_v29  ;;  %v891_v32 = vmul.f32 0.35355338, %v888_v29 }
 0x923   :  { %1797 = vrot.lane.b32.xlu2 %v2396_v30, %s1987_s26 }
 0x927   :  { %994 = vrot.lane.b32.xlu1 %v890_v31, %s1985_s22 }
 0x92b   :  { %1102 = vrot.lane.b32.xlu2 %v888_v29, %s1982_s19 }
 0x92f   :  { %1000 = vrot.lane.b32.xlu1 %v888_v29, %s1981_s18 }
 0x937   :  { %1204 = vrot.lane.b32.xlu1 %v888_v29, %s1984_s21 }
 0x93f   :  { %996 = vrot.lane.b32.xlu1 %v891_v32, %s1985_s22 }
 0x947   :  { %1096 = vrot.lane.b32.xlu1 %v890_v31, %s1983_s20 }
 0x94f   :  { %1098 = vrot.lane.b32.xlu1 %v891_v32, %s1983_s20 }
 0x97d   :  { %v1798_v33 = vpop.permute.xlu2 %1797 }
 0x97e   :  { %v1799_v34 = vunpack.i.l.bf16 %v1798_v33  ;;  %v1800_v2 = vunpack.i.h.bf16 %v1798_v33 }
 0x980   :  { %985 = vmatpush.msra.mxu1 %v1799_v34 }
 0x982   :  { %986 = vmatpush.msra.mxu1 %v1800_v2 }
 0x985   :  { %v1103_v27 = vpop.permute.xlu2 %1102 }
 0x986   :  { %1712 = vmatpush.xpose.msk.msrb.mxu1 %vm154_vm8, %v1103_v27 }
 0x989   :  { %v895_v35 = vpop.permute.xlu1 %894 }
 0x991   :  { %v999_v37 = vpop.permute.xlu1 %998 }
 0x993   :  { %v897_v38 = vpop.permute.xlu0 %896 }
 0x994   :  { %1700 = vmatpush.xpose.msk.msrb.mxu0 %vm154_vm8, %v897_v38 }
 0x998   :  { %1701 = vmatpush.xpose.msk.msrb.mxu0 %vm154_vm8, %v895_v35 }
 0x999   :  { %v995_v39 = vpop.permute.xlu1 %994 }
 0x99b   :  { %1702 = vmatmul.msk.f32.vlgmr.msrb.gmra.mxu0 %vm154_vm8, %v890_v31 }
 0x9a1   :  { %v1001_v41 = vpop.permute.xlu1 %1000 }
 0x9a2   :  { %1706 = vmatpush.xpose.msk.msrb.mxu2 %vm154_vm8, %v1001_v41 }
 0x9a3   :  { %1703 = vmatmul.msk.f32.gmra.mxu0 %vm154_vm8, %v891_v32 }
 0x9a6   :  { %1707 = vmatpush.xpose.msk.msrb.mxu2 %vm154_vm8, %v999_v37 }
 0x9a9   :  { %1708 = vmatmul.msk.f32.vlgmr.msrb.gmra.mxu2 %vm154_vm8, %v995_v39  ;;  %v1205_v62 = vpop.permute.xlu1 %1204 }
 0x9aa   :  { %1718 = vmatpush.xpose.msk.msra.mxu2 %vm154_vm8, %v1205_v62 }
 0x9b1   :  { %v997_v42 = vpop.permute.xlu1 %996 }
 0x9b2   :  { %1709 = vmatmul.msk.f32.gmra.mxu2 %vm154_vm8, %v997_v42  ;;  %v1937_v42 = vld [vmem:[%s2640_s2 + $0x8] sm:$0xff]  ;;  %s2653_s2 = smov 16  }
 0x9b9   :  { %v1097_v21 = vpop.permute.xlu1 %1096 }
 0x9c1   :  { %v1099_v26 = vpop.permute.xlu1 %1098 }
 0xa18   :  { %v925_v54 = vpop.f32.mrf.mxu0 }
 0xa19   :  { %v926_v43 = vadd.f32 %v925_v54, %v2143_v18 }
 0xa1b   :  { %v931_v44 = vsel %vm188_vm9, %v926_v43, -inf }
 0xa1c   :  { %932 = vmax.xlane.f32.xlu2 %v931_v44 }
 0xa20   :  { %v928_v45 = vpop.f32.mrf.mxu0 }
 0xa21   :  { %v929_v46 = vadd.f32 %v928_v45, %v2150_v22 }
 0xa23   :  { %v934_v57 = vsel %vm188_vm9, %v929_v46, -inf }
 0xa24   :  { %935 = vmax.xlane.f32.xlu2 %v934_v57 }
 0xa2c   :  { %v1027_v47 = vpop.f32.mrf.mxu2 }
 0xa2d   :  { %v1028_v0 = vadd.f32 %v1936_v60, %v1027_v47 }
 0xa2f   :  { %v1033_v1 = vsel %vm188_vm9, %v1028_v0, -inf }
 0xa35   :  { %v1030_v48 = vpop.f32.mrf.mxu2 }
 0xa36   :  { %v2423_v49 = vadd.f32 %v1030_v48, %v2150_v22 }
 0xa38   :  { %v1036_v51 = vsel %vm188_vm9, %v2423_v49, -inf }
 0xa39   :  { %1037 = vmax.xlane.f32.xlu1 %v1036_v51 }
 0xa3c   :  { %1202 = vrot.lane.b32.xlu2 %v2388_v28, %s1984_s21  ;;  %s2654_s21 = smov 24  }
 0xa44   :  { %1198 = vrot.lane.b32.xlu2 %v890_v31, %s1986_s0 }
 0xa8f   :  { %v933_v18 = vpop.xlane.xlu2 %932 }
 0xa90   :  { %v937_v50 = vsub.f32 %v926_v43, %v933_v18 }
 0xa92   :  { %v939_v53 = vmul.f32 1.442695, %v937_v50 }
 0xa94   :  { %1888 = vpow2.f32 %v939_v53 }
 0xa97   :  { %v936_v55 = vpop.xlane.xlu2 %935 }
 0xa98   :  { %v938_v52 = vsub.f32 %v929_v46, %v936_v55 }
 0xa9a   :  { %v1889_v56 = vpop.eup %1888  ;;  %v941_v58 = vmul.f32 1.442695, %v938_v52 }
 0xa9b   :  { %v943_v22 = vsel %vm188_vm9, %v1889_v56, 0.0 }
 0xa9c   :  { %1890 = vpow2.f32 %v941_v58  ;;  %944 = vadd.xlane.f32.xlu0 %v943_v22 }
 0xa9f   :  { %v1203_v59 = vpop.permute.xlu2 %1202 }
 0xaa0   :  { %1719 = vmatpush.xpose.msk.msra.mxu2 %vm154_vm8, %v1203_v59 }
 0xaa2   :  { %v1891_v61 = vpop.eup %1890 }
 0xaa3   :  { %v946_v3 = vsel %vm188_vm9, %v1891_v61, 0.0 }
 0xaa4   :  { %947 = vadd.xlane.f32.xlu2 %v946_v3 }
 0xaa7   :  { %v1199_v63 = vpop.permute.xlu2 %1198 }
 0xaa8   :  { %1720 = vmatmul.msk.f32.vlgmr.msra.gmra.mxu2 %vm154_vm8, %v1199_v63 }
 0xaac   :  { %v1038_v2 = vpop.xlane.xlu1 %1037 }
 0xaad   :  { %v1040_v37 = vsub.f32 %v2423_v49, %v1038_v2 }
 0xaaf   :  { %v1043_v41 = vmul.f32 1.442695, %v1040_v37 }
 0xab0   :  { %1100 = vrot.lane.b32.xlu0 %v2388_v28, %s1982_s19  ;;  %s1648_s19 = sshll.u32 %s2648_s10, 4  ;;  %s1649_s19 = int_to_ptr.hbm [resolvable:$true] %s1648_s19 }
 0xabc   :  { %1200 = vrot.lane.b32.xlu2 %v891_v32, %s1986_s0 }
 0xada   :  { %1034 = vmax.xlane.f32.xlu0 %v1033_v1 }
 0xb0f   :  { %v945_v6 = vpop.xlane.xlu0 %944 }
 0xb10   :  { %1892 = vrcp.f32 %v945_v6 }
 0xb16   :  { %v1893_v4 = vpop.eup %1892 }
 0xb17   :  { %v951_v5 = vmul.f32 %v1893_v4, %v945_v6  ;;  %v948_v7 = vpop.xlane.xlu2 %947 }
 0xb18   :  { %1894 = vrcp.f32 %v948_v7 }
 0xb19   :  { %v953_v8 = vsub.f32 2.0, %v951_v5 }
 0xb1b   :  { %v955_v9 = vmul.f32 %v1893_v4, %v953_v8 }
 0xb1d   :  { %v957_v11 = vmul.f32 %v1889_v56, %v955_v9 }
 0xb1e   :  { %v1895_v12 = vpop.eup %1894 }
 0xb1f   :  { %v952_v10 = vmul.f32 %v1895_v12, %v948_v7  ;;  %1704 = vmatmul.msk.f32.vlgmr.msra.gmra.mxu1 %vm188_vm9, %v957_v11  ;;  %v1201_v13 = vpop.permute.xlu2 %1200 }
 0xb20   :  { %1721 = vmatmul.msk.f32.gmra.mxu2 %vm154_vm8, %v1201_v13 }
 0xb21   :  { %v954_v15 = vsub.f32 2.0, %v952_v10 }
 0xb22   :  { %v1101_v16 = vpop.permute.xlu0 %1100 }
 0xb23   :  { %v956_v19 = vmul.f32 %v1895_v12, %v954_v15  ;;  %1713 = vmatpush.xpose.msk.msrb.mxu1 %vm154_vm8, %v1101_v16 }
 0xb25   :  { %v958_v20 = vmul.f32 %v1891_v61, %v956_v19 }
 0xb27   :  { %1705 = vmatmul.msk.f32.gmra.mxu1 %vm188_vm9, %v958_v20 }
 0xb2b   :  { %v1231_v17 = vpop.f32.mrf.mxu2 }
 0xb2c   :  { %v1232_v23 = vadd.f32 %v1936_v60, %v1231_v17 }
 0xb2e   :  { %v1237_v24 = vsel %vm188_vm9, %v1232_v23, -inf }
 0xb2f   :  { %1238 = vmax.xlane.f32.xlu0 %v1237_v24  ;;  %1714 = vmatmul.msk.f32.vlgmr.msrb.gmra.mxu1 %vm154_vm8, %v1097_v21 }
 0xb37   :  { %1715 = vmatmul.msk.f32.gmra.mxu1 %vm154_vm8, %v1099_v26 }
 0xb4d   :  { %v1035_v28 = vpop.xlane.xlu0 %1034 }
 0xb4e   :  { %v1039_v25 = vsub.f32 %v1028_v0, %v1035_v28 }
 0xb50   :  { %v1041_v29 = vmul.f32 1.442695, %v1039_v25 }
 0xb52   :  { %1896 = vpow2.f32 %v1041_v29 }
 0xb53   :  { %1898 = vpow2.f32 %v1043_v41 }
 0xb58   :  { %v1897_v31 = vpop.eup %1896 }
 0xb59   :  { %v1045_v32 = vsel %vm188_vm9, %v1897_v31, 0.0  ;;  %v1899_v48 = vpop.eup %1898 }
 0xb5a   :  { %1046 = vadd.xlane.f32.xlu0 %v1045_v32  ;;  %v1048_v49 = vsel %vm188_vm9, %v1899_v48, 0.0 }
 0xb6e   :  { %1802 = vrot.lane.b32.xlu0 %v2396_v30, %s1988_s27 }
 0xb9c   :  { %v2451_v33 = vpop.f32.mrf.mxu1 }
 0xba2   :  { %v1239_v62 = vpop.xlane.xlu0 %1238 }
 0xba3   :  { %v1234_v39 = vpop.f32.mrf.mxu2  ;;  %v1243_v45 = vsub.f32 %v1232_v23, %v1239_v62 }
 0xba4   :  { %v2453_v34 = vpop.f32.mrf.mxu1  ;;  %v1235_v54 = vadd.f32 %v1937_v42, %v1234_v39 }
 0xba5   :  { %v1245_v47 = vmul.f32 1.442695, %v1243_v45 }
 0xba6   :  { %v1240_v57 = vsel %vm188_vm9, %v1235_v54, -inf }
 0xba7   :  { %1900 = vpow2.f32 %v1245_v47 }
 0xbac   :  { %v1129_v27 = vpop.f32.mrf.mxu1 }
 0xbad   :  { %v1130_v35 = vadd.f32 %v1936_v60, %v1129_v27  ;;  %v2463_v51 = vpop.eup %1900 }
 0xbae   :  { %v1249_v18 = vsel %vm188_vm9, %v2463_v51, 0.0 }
 0xbaf   :  { %v1135_v38 = vsel %vm188_vm9, %v1130_v35, -inf }
 0xbb0   :  { %1136 = vmax.xlane.f32.xlu2 %v1135_v38 }
 0xbb4   :  { %v1132_v43 = vpop.f32.mrf.mxu1 }
 0xbb5   :  { %v1133_v44 = vadd.f32 %v1937_v42, %v1132_v43 }
 0xbb7   :  { %v1138_v46 = vsel %vm188_vm9, %v1133_v44, -inf }
 0xbb8   :  { %1139 = vmax.xlane.f32.xlu1 %v1138_v46  ;;  %1241 = vmax.xlane.f32.xlu2 %v1240_v57 }
 0xbc0   :  { %1049 = vadd.xlane.f32.xlu1 %v1048_v49 }
 0xbc8   :  { %1250 = vadd.xlane.f32.xlu1 %v1249_v18 }
 0xbcd   :  { %v1047_v50 = vpop.xlane.xlu0 %1046 }
 0xbce   :  { %1902 = vrcp.f32 %v1047_v50 }
 0xbd4   :  { %v1903_v53 = vpop.eup %1902 }
 0xbd5   :  { %v1053_v55 = vmul.f32 %v1903_v53, %v1047_v50 }
 0xbd7   :  { %v1055_v52 = vsub.f32 2.0, %v1053_v55 }
 0xbd9   :  { %v1057_v56 = vmul.f32 %v1903_v53, %v1055_v52 }
 0xbdb   :  { %v1059_v61 = vmul.f32 %v1897_v31, %v1057_v56 }
 0xbe0   :  { %v1803_v58 = vpop.permute.xlu0 %1802 }
 0xbe1   :  { %v1804_v22 = vunpack.i.l.bf16 %v1803_v58  ;;  %1807 = vrot.lane.b32.xlu1 %v2396_v30, %s1990_s29  ;;  %v1805_v59 = vunpack.i.h.bf16 %v1803_v58 }
 0xbe3   :  { %1087 = vmatpush.msra.mxu0 %v1804_v22 }
 0xbe5   :  { %1088 = vmatpush.msra.mxu0 %v1805_v59  ;;  %v1727_v59 = vld [vmem:[%s2644_s6 + $0x38] sm:$0xff] }
 0xbe6   :  { %1710 = vmatmul.msk.f32.vlgmr.msra.gmra.mxu0 %vm188_vm9, %v1059_v61  ;;  %v1726_v61 = vld [vmem:[%s2644_s6 + $0x30] sm:$0xff]  ;;  %1353 = vmatpush.msra.mxu1 %v1727_v59 }
 0xbe8   :  { %1354 = vmatpush.msra.mxu1 %v1726_v61 }
 0xc23   :  { %v1137_v3 = vpop.xlane.xlu2 %1136 }
 0xc24   :  { %v1141_v6 = vsub.f32 %v1130_v35, %v1137_v3  ;;  %v1725_v3 = vld [vmem:[%s2644_s6 + $0x28] sm:$0xff] }
 0xc25   :  { %1355 = vmatpush.msra.mxu1 %v1725_v3 }
 0xc26   :  { %v1143_v4 = vmul.f32 1.442695, %v1141_v6 }
 0xc2b   :  { %v1140_v63 = vpop.xlane.xlu1 %1139  ;;  %v1242_v60 = vpop.xlane.xlu2 %1241 }
 0xc2c   :  { %v1244_v0 = vsub.f32 %v1235_v54, %v1242_v60  ;;  %v1142_v8 = vsub.f32 %v1133_v44, %v1140_v63  ;;  %v1724_v63 = vld [vmem:[%s2644_s6 + $0x20] sm:$0xff] }
 0xc2d   :  { %1356 = vmatpush.msra.mxu1 %v1724_v63 }
 0xc2e   :  { %v1247_v1 = vmul.f32 1.442695, %v1244_v0  ;;  %v1145_v12 = vmul.f32 1.442695, %v1142_v8 }
 0xc30   :  { %1904 = vpow2.f32 %v1247_v1 }
 0xc33   :  { %v1050_v5 = vpop.xlane.xlu1 %1049 }
 0xc34   :  { %1906 = vrcp.f32 %v1050_v5 }
 0xc35   :  { %1908 = vpow2.f32 %v1143_v4 }
 0xc36   :  { %v1905_v7 = vpop.eup %1904  ;;  %1910 = vpow2.f32 %v1145_v12 }
 0xc37   :  { %v1252_v9 = vsel %vm188_vm9, %v1905_v7, 0.0 }
 0xc38   :  { %1253 = vadd.xlane.f32.xlu2 %v1252_v9 }
 0xc3a   :  { %v1907_v11 = vpop.eup %1906 }
 0xc3b   :  { %v1054_v10 = vmul.f32 %v1907_v11, %v1050_v5  ;;  %v1909_v13 = vpop.eup %1908  ;;  %v1251_v23 = vpop.xlane.xlu1 %1250 }
 0xc3c   :  { %v1147_v19 = vsel %vm188_vm9, %v1909_v13, 0.0  ;;  %v1911_v17 = vpop.eup %1910  ;;  %1912 = vrcp.f32 %v1251_v23 }
 0xc3d   :  { %v1056_v15 = vsub.f32 2.0, %v1054_v10  ;;  %v1150_v21 = vsel %vm188_vm9, %v1911_v17, 0.0 }
 0xc3f   :  { %v1058_v16 = vmul.f32 %v1907_v11, %v1056_v15 }
 0xc40   :  { %1148 = vadd.xlane.f32.xlu2 %v1147_v19 }
 0xc41   :  { %v1060_v20 = vmul.f32 %v1899_v48, %v1058_v16 }
 0xc42   :  { %v1913_v32 = vpop.eup %1912 }
 0xc43   :  { %1711 = vmatmul.msk.f32.gmra.mxu0 %vm188_vm9, %v1060_v20  ;;  %v1257_v27 = vmul.f32 %v1913_v32, %v1251_v23 }
 0xc45   :  { %v1259_v39 = vsub.f32 2.0, %v1257_v27  ;;  %v1732_v27 = vld [vmem:[%s2645_s7 + $0x30] sm:$0xff] }
 0xc47   :  { %v1261_v54 = vmul.f32 %v1913_v32, %v1259_v39 }
 0xc48   :  { %1151 = vadd.xlane.f32.xlu2 %v1150_v21 }
 0xc49   :  { %v1263_v48 = vmul.f32 %v2463_v51, %v1261_v54 }
 0xc53   :  { %v1808_v24 = vpop.permute.xlu1 %1807 }
 0xc54   :  { %v1809_v26 = vunpack.i.l.bf16 %v1808_v24  ;;  %v1810_v28 = vunpack.i.h.bf16 %v1808_v24 }
 0xc56   :  { %1189 = vmatpush.msra.mxu3 %v1809_v26 }
 0xc58   :  { %1190 = vmatpush.msra.mxu3 %v1810_v28 }
 0xc60   :  { %1812 = vrot.lane.b32.xlu2 %v2396_v30, %s1989_s28 }
 0xc63   :  { %v1090_v25 = vpop.f32.mrf.mxu0 }
 0xc64   :  { %1302 = vrot.lane.b32.xlu0 %v1090_v25, %s1991_s30 }
 0xcab   :  { %v1254_v29 = vpop.xlane.xlu2 %1253 }
 0xcb3   :  { %v1149_v31 = vpop.xlane.xlu2 %1148 }
 0xcb4   :  { %1914 = vrcp.f32 %v1149_v31 }
 0xcb5   :  { %1916 = vrcp.f32 %v1254_v29 }
 0xcba   :  { %v1915_v2 = vpop.eup %1914 }
 0xcbb   :  { %v1155_v35 = vmul.f32 %v1915_v2, %v1149_v31  ;;  %v1152_v37 = vpop.xlane.xlu2 %1151  ;;  %v1917_v62 = vpop.eup %1916 }
 0xcbc   :  { %1918 = vrcp.f32 %v1152_v37  ;;  %v1258_v43 = vmul.f32 %v1917_v62, %v1254_v29 }
 0xcbd   :  { %v1157_v38 = vsub.f32 2.0, %v1155_v35  ;;  %v1731_v35 = vld [vmem:[%s2645_s7 + $0x28] sm:$0xff] }
 0xcbe   :  { %v1260_v49 = vsub.f32 2.0, %v1258_v43 }
 0xcbf   :  { %v1159_v41 = vmul.f32 %v1915_v2, %v1157_v38  ;;  %v1733_v2 = vld [vmem:[%s2645_s7 + $0x38] sm:$0xff] }
 0xcc0   :  { %v1262_v53 = vmul.f32 %v1917_v62, %v1260_v49  ;;  %v1093_v52 = vpop.f32.mrf.mxu0  ;;  %1447 = vmatpush.msrb.mxu3 %v1733_v2 }
 0xcc1   :  { %v1161_v42 = vmul.f32 %v1909_v13, %v1159_v41 }
 0xcc2   :  { %v1919_v30 = vpop.eup %1918  ;;  %v1264_v55 = vmul.f32 %v1905_v7, %v1262_v53  ;;  %1448 = vmatpush.msrb.mxu3 %v1732_v27 }
 0xcc3   :  { %v1156_v44 = vmul.f32 %v1919_v30, %v1152_v37  ;;  %1716 = vmatmul.msk.f32.vlgmr.msra.gmra.mxu3 %vm188_vm9, %v1161_v42  ;;  %v1813_v45 = vpop.permute.xlu2 %1812  ;;  %v1730_v37 = vld [vmem:[%s2645_s7 + $0x20] sm:$0xff]  ;;  %s1994_s7 = smov [#allocation5]  }
 0xcc4   :  { %v1814_v46 = vunpack.i.l.bf16 %v1813_v45  ;;  %v1815_v47 = vunpack.i.h.bf16 %v1813_v45  ;;  %1449 = vmatpush.msrb.mxu3 %v1731_v35  ;;  %s1646_s11 = sshll.u32 %s1994_s7, 4  ;;  %s1647_s11 = int_to_ptr.vmem [resolvable:$true] %s1646_s11 }
 0xcc5   :  { %v1158_v57 = vsub.f32 2.0, %v1156_v44 }
 0xcc6   :  { %1291 = vmatpush.msrb.mxu0 %v1814_v46  ;;  %1450 = vmatpush.msrb.mxu3 %v1730_v37 }
 0xcc7   :  { %v1160_v18 = vmul.f32 %v1919_v30, %v1158_v57 }
 0xcc8   :  { %1292 = vmatpush.msrb.mxu0 %v1815_v47 }
 0xcc9   :  { %1722 = vmatmul.msk.f32.vlgmr.msrb.gmra.mxu0 %vm188_vm9, %v1263_v48  ;;  %v1162_v50 = vmul.f32 %v1911_v17, %v1160_v18  ;;  %v1828_v48 = vld [vmem:[%s2641_s3 + $0x8] ss:$0 sm:$0xff] }
 0xccb   :  { %1717 = vmatmul.msk.f32.gmra.mxu3 %vm188_vm9, %v1162_v50 }
 0xcd1   :  { %1723 = vmatmul.msk.f32.gmra.mxu0 %vm188_vm9, %v1264_v55  ;;  %v1829_v55 = vld [vmem:[%s2641_s3 + $0x9] ss:$0 sm:$0xff] }
 0xcd6   :  { %v1303_v60 = vpop.permute.xlu0 %1302 }
 0xcd7   :  { %v1324_v0 = vsel %vm154_vm8, %v2451_v33, %v1303_v60  ;;  %v1827_v33 = vld [vmem:[%s2641_s3 + $0xa] ss:$0 sm:$0xff]  ;;  %v1753_v60 = vld [vmem:[%s2646_s8 + $0xf8] sm:$0xff] }
 0xcd8   :  { %1517 = vmatpush.msrb.mxu2 %v1753_v60 }
 0xd46   :  { %v1192_v56 = vpop.f32.mrf.mxu3  ;;  %v1294_v58 = vpop.f32.mrf.mxu0 }
 0xd47   :  { %1310 = vrot.lane.b32.xlu0 %v1192_v56, %s2653_s2  ;;  %1318 = vrot.lane.b32.xlu1 %v1294_v58, %s2654_s21 }
 0xd4e   :  { %v1195_v51 = vpop.f32.mrf.mxu3  ;;  %v1297_v22 = vpop.f32.mrf.mxu0 }
 0xd4f   :  { %1304 = vrot.lane.b32.xlu0 %v1093_v52, %s1991_s30  ;;  %1312 = vrot.lane.b32.xlu1 %v1195_v51, %s2653_s2 }
 0xd50   :  { %1320 = vrot.lane.b32.xlu2 %v1297_v22, %s2654_s21 }
 0xdaa   :  { %v1321_v11 = vpop.permute.xlu2 %1320 }
 0xdb9   :  { %v1311_v1 = vpop.permute.xlu0 %1310  ;;  %v1319_v6 = vpop.permute.xlu1 %1318 }
 0xdba   :  { %v1326_v4 = vsel %vm188_vm9, %v1324_v0, %v1311_v1  ;;  %v1752_v0 = vld [vmem:[%s2646_s8 + $0xf0] sm:$0xff]  ;;  %v1751_v1 = vld [vmem:[%s2646_s8 + $0xe8] sm:$0xff] }
 0xdbb   :  { %v1328_v5 = vsel %vm586_vm10, %v1326_v4, %v1319_v6  ;;  %1518 = vmatpush.msrb.mxu2 %v1752_v0  ;;  %v1750_v6 = vld [vmem:[%s2646_s8 + $0xe0] sm:$0xff]  ;;  %v1749_v4 = vld [vmem:[%s2646_s8 + $0xd8] sm:$0xff] }
 0xdbc   :  { %1728 = vmatmul.msk.f32.vlgmr.msra.gmra.mxu1 %vm53_vm0, %v1328_v5  ;;  %v1748_v5 = vld [vmem:[%s2646_s8 + $0xd0] sm:$0xff] }
 0xdbd   :  { %1519 = vmatpush.msrb.mxu2 %v1751_v1 }
 0xdbf   :  { %1520 = vmatpush.msrb.mxu2 %v1750_v6 }
 0xdc1   :  { %v1305_v7 = vpop.permute.xlu0 %1304  ;;  %v1313_v8 = vpop.permute.xlu1 %1312  ;;  %1521 = vmatpush.msrb.mxu2 %v1749_v4 }
 0xdc2   :  { %v1325_v9 = vsel %vm154_vm8, %v2453_v34, %v1305_v7  ;;  %v1747_v7 = vld [vmem:[%s2646_s8 + $0xc8] sm:$0xff] }
 0xdc3   :  { %v1327_v12 = vsel %vm188_vm9, %v1325_v9, %v1313_v8  ;;  %1522 = vmatpush.msrb.mxu2 %v1748_v5  ;;  %v1746_v8 = vld [vmem:[%s2646_s8 + $0xc0] sm:$0xff]  ;;  %v1745_v9 = vld [vmem:[%s2646_s8 + $0xb8] sm:$0xff] }
 0xdc4   :  { %v1329_v10 = vsel %vm586_vm10, %v1327_v12, %v1321_v11  ;;  %v1744_v11 = vld [vmem:[%s2646_s8 + $0xb0] sm:$0xff]  ;;  %v1743_v12 = vld [vmem:[%s2646_s8 + $0xa8] sm:$0xff] }
 0xdc5   :  { %1729 = vmatmul.msk.f32.gmra.mxu1 %vm53_vm0, %v1329_v10  ;;  %1523 = vmatpush.msrb.mxu2 %v1747_v7  ;;  %v1742_v10 = vld [vmem:[%s2646_s8 + $0xa0] sm:$0xff] }
 0xdc7   :  { %1524 = vmatpush.msrb.mxu2 %v1746_v8 }
 0xdc9   :  { %1525 = vmatpush.msrb.mxu2 %v1745_v9 }
 0xdcb   :  { %1526 = vmatpush.msrb.mxu2 %v1744_v11 }
 0xdcd   :  { %1527 = vmatpush.msrb.mxu2 %v1743_v12  ;;  %v1615_v12 = vld [vmem:[%s2647_s9 + $0x18] sm:$0xff] }
 0xdce   :  { %1631 = vmatpush.msra.mxu0 %v1615_v12 }
 0xdcf   :  { %1528 = vmatpush.msrb.mxu2 %v1742_v10  ;;  %v1614_v10 = vld [vmem:[%s2647_s9 + $0x10] sm:$0xff] }
 0xdd0   :  { %1632 = vmatpush.msra.mxu0 %v1614_v10 }
 0xe39   :  { %v1358_v13 = vpop.f32.mrf.mxu1 }
 0xe3a   :  { %v1364_v15 = vadd.f32 %v1358_v13, %v2348_v36  ;;  %v1830_v13 = vld [vmem:[%s2642_s4 + $0x2] ss:$0 sm:$0xff] }
 0xe3c   :  { %v2513_v16 = vadd.f32 %v1827_v33, %v1364_v15  ;;  %v1740_v15 = vld [vmem:[%s2646_s8 + $0x90] sm:$0xff] }
 0xe3e   :  { %v1372_v19 = vsel %vm53_vm0, %v2513_v16, 0.0 }
 0xe3f   :  { %1373 = vadd.xlane.f32.xlu0 %v1372_v19 }
 0xe42   :  { %v1361_v34 = vpop.f32.mrf.mxu1 }
 0xe43   :  { %v1365_v20 = vadd.f32 %v1361_v34, %v2353_v40  ;;  %v1739_v34 = vld [vmem:[%s2646_s8 + $0x88] sm:$0xff] }
 0xe45   :  { %v2518_v17 = vadd.f32 %v1827_v33, %v1365_v20  ;;  %v1741_v33 = vld [vmem:[%s2646_s8 + $0x98] sm:$0xff] }
 0xe46   :  { %1529 = vmatpush.msrb.mxu2 %v1741_v33  ;;  %v1613_v33 = vld [vmem:[%s2647_s9 + $0x8] sm:$0xff] }
 0xe47   :  { %v1375_v21 = vsel %vm53_vm0, %v2518_v17, 0.0  ;;  %1633 = vmatpush.msra.mxu0 %v1613_v33 }
 0xe48   :  { %1376 = vadd.xlane.f32.xlu1 %v1375_v21  ;;  %1530 = vmatpush.msrb.mxu2 %v1740_v15  ;;  %v1738_v21 = vld [vmem:[%s2646_s8 + $0x80] sm:$0xff] }
 0xe4a   :  { %1531 = vmatpush.msrb.mxu2 %v1739_v34  ;;  %v1612_v34 = vld [vmem:[%s2647_s9] sm:$0xff] }
 0xe4b   :  { %1634 = vmatpush.msra.mxu0 %v1612_v34 }
 0xe4c   :  { %1532 = vmatpush.msrb.mxu2 %v1738_v21 }
 0xeb2   :  { %v1374_v23 = vpop.xlane.xlu0 %1373 }
 0xeb3   :  { %v1378_v24 = vmul.f32 %v1374_v23, %v2073_v14 }
 0xeb5   :  { %v1380_v36 = vsub.f32 %v2513_v16, %v1378_v24 }
 0xeb7   :  { %v1382_v26 = vmul.f32 %v1380_v36, %v1380_v36 }
 0xeb9   :  { %v1384_v28 = vsel %vm53_vm0, %v1382_v26, 0.0 }
 0xeba   :  { %1385 = vadd.xlane.f32.xlu2 %v1384_v28 }
 0xebb   :  { %v1377_v25 = vpop.xlane.xlu1 %1376 }
 0xebc   :  { %v1379_v29 = vmul.f32 %v1377_v25, %v2073_v14 }
 0xebe   :  { %v1381_v40 = vsub.f32 %v2518_v17, %v1379_v29 }
 0xec0   :  { %v1383_v31 = vmul.f32 %v1381_v40, %v1381_v40 }
 0xec2   :  { %v1387_v32 = vsel %vm53_vm0, %v1383_v31, 0.0 }
 0xec3   :  { %1388 = vadd.xlane.f32.xlu0 %v1387_v32 }
 0xf2d   :  { %v1386_v38 = vpop.xlane.xlu2 %1385 }
 0xf2e   :  { %v1390_v39 = vmul.f32 %v1386_v38, %v2073_v14 }
 0xf30   :  { %v1392_v41 = vadd.f32 1e-05, %v1390_v39 }
 0xf32   :  { %1920 = vrsqrt.f32 %v1392_v41  ;;  %vm1400_vm9 = vweird.f32 %v1392_v41 }
 0xf36   :  { %v1389_v62 = vpop.xlane.xlu0 %1388 }
 0xf37   :  { %v1391_v42 = vmul.f32 %v1389_v62, %v2073_v14 }
 0xf38   :  { %v1921_v30 = vpop.eup %1920 }
 0xf39   :  { %v1395_v54 = vmul.f32 %v1921_v30, %v1392_v41  ;;  %v1393_v43 = vadd.f32 1e-05, %v1391_v42  ;;  %vm1401_vm8 = vweird.f32 %v1921_v30 }
 0xf3a   :  { %vm1402_vm10 = vmor %vm1400_vm9, %vm1401_vm8 }
 0xf3b   :  { %v1396_v44 = vmul.f32 %v1921_v30, %v1395_v54  ;;  %1922 = vrsqrt.f32 %v1393_v43  ;;  %vm1410_vm5 = vweird.f32 %v1393_v43 }
 0xf3d   :  { %v1397_v45 = vmul.f32 0.5, %v1396_v44 }
 0xf3f   :  { %v1398_v46 = vsub.f32 1.5, %v1397_v45 }
 0xf41   :  { %v1923_v57 = vpop.eup %1922  ;;  %v1399_v47 = vmul.f32 %v1921_v30, %v1398_v46 }
 0xf42   :  { %v1405_v49 = vmul.f32 %v1923_v57, %v1393_v43  ;;  %vm1411_vm4 = vweird.f32 %v1923_v57 }
 0xf43   :  { %v1403_v18 = vsel %vm1402_vm10, %v1921_v30, %v1399_v47  ;;  %vm1412_vm6 = vmor %vm1410_vm5, %vm1411_vm4 }
 0xf44   :  { %v1414_v50 = vmul.f32 %v1403_v18, %v1380_v36  ;;  %v1406_v53 = vmul.f32 %v1923_v57, %v1405_v49 }
 0xf46   :  { %v1417_v52 = vmul.f32 %v1828_v48, %v1414_v50  ;;  %v1407_v56 = vmul.f32 0.5, %v1406_v53 }
 0xf48   :  { %v1408_v58 = vsub.f32 1.5, %v1407_v56  ;;  %v1420_v51 = vadd.f32 %v1829_v55, %v1417_v52 }
 0xf4a   :  { %v1409_v22 = vmul.f32 %v1923_v57, %v1408_v58  ;;  %1734 = vmatmul.msk.f32.vlgmr.msrb.gmra.mxu3 %vm53_vm0, %v1420_v51 }
 0xf4c   :  { %v1413_v59 = vsel %vm1412_vm6, %v1923_v57, %v1409_v22  ;;  %vm1610_vm6 = vcmask 1040384  }
 0xf4d   :  { %v1415_v61 = vmul.f32 %v1413_v59, %v1381_v40 }
 0xf4f   :  { %v1418_v3 = vmul.f32 %v1828_v48, %v1415_v61 }
 0xf51   :  { %v1421_v63 = vadd.f32 %v1829_v55, %v1418_v3  ;;  %v1831_v55 = vld [vmem:[%s2641_s3 + $0xb] ss:$0 sm:$0xff] }
 0xf53   :  { %1735 = vmatmul.msk.f32.gmra.mxu3 %vm53_vm0, %v1421_v63 }
 0xfcd   :  { %v1452_v19 = vpop.f32.mrf.mxu3 }
 0xfce   :  { %v1453_v20 = vadd.f32 %v1830_v13, %v1452_v19 }
 0xfd0   :  { %v1736_v23 = vmul.f32 -1.702, %v1453_v20 }
 0xfd2   :  { %v1462_v24 = vmul.f32 1.442695, %v1736_v23 }
 0xfd4   :  { %1924 = vpow2.f32 %v1462_v24 }
 0xfd6   :  { %v1455_v36 = vpop.f32.mrf.mxu3 }
 0xfd7   :  { %v1456_v26 = vadd.f32 %v1830_v13, %v1455_v36 }
 0xfd9   :  { %v1737_v28 = vmul.f32 -1.702, %v1456_v26 }
 0xfda   :  { %v1925_v25 = vpop.eup %1924 }
 0xfdb   :  { %v1466_v29 = vadd.f32 1.0, %v1925_v25  ;;  %v1464_v40 = vmul.f32 1.442695, %v1737_v28 }
 0xfdd   :  { %1926 = vrcp.f32 %v1466_v29  ;;  %v1479_v37 = vand.u32 2147483648, %v1466_v29  ;;  %v1477_v39 = vand.u32 2147483647, %v1466_v29  ;;  %vm1473_vm11 = vweird.f32 %v1466_v29 }
 0xfde   :  { %1928 = vpow2.f32 %v1464_v40  ;;  %v1833_v40 = vld [vmem:[%s2641_s3 + $0xd] ss:$0 sm:$0xff] }
 0xfdf   :  { %v1480_v62 = vor.u32 1.1754944e-38, %v1479_v37  ;;  %vm1478_vm13 = vcmp.eq.f32.partialorder %v1477_v39, 8.507059e+37 }
 0xfe3   :  { %v1927_v31 = vpop.eup %1926 }
 0xfe4   :  { %v1929_v32 = vpop.eup %1928  ;;  %v1469_v2 = vmul.f32 %v1927_v31, %v1466_v29  ;;  %vm1474_vm7 = vweird.f32 %v1927_v31 }
 0xfe5   :  { %v1467_v27 = vadd.f32 1.0, %v1929_v32  ;;  %vm1475_vm12 = vmor %vm1473_vm11, %vm1474_vm7  ;;  %vm1639_vm7 = vcmask 123904  }
 0xfe6   :  { %v1470_v35 = vsub.f32 1.0, %v1469_v2 }
 0xfe7   :  { %1930 = vrcp.f32 %v1467_v27  ;;  %v1494_v46 = vand.u32 2147483648, %v1467_v27  ;;  %v1492_v47 = vand.u32 2147483647, %v1467_v27  ;;  %vm1488_vm15 = vweird.f32 %v1467_v27 }
 0xfe8   :  { %v1471_v38 = vmul.f32 %v1927_v31, %v1470_v35 }
 0xfe9   :  { %v1495_v49 = vor.u32 1.1754944e-38, %v1494_v46  ;;  %vm1493_vm2 = vcmp.eq.f32.partialorder %v1492_v47, 8.507059e+37 }
 0xfea   :  { %v1472_v41 = vadd.f32 %v1927_v31, %v1471_v38 }
 0xfec   :  { %v1476_v42 = vsel %vm1475_vm12, %v1927_v31, %v1472_v41 }
 0xfed   :  { %v1931_v30 = vpop.eup %1930  ;;  %v1481_v54 = vsel %vm1478_vm13, %v1480_v62, %v1476_v42 }
 0xfee   :  { %v1498_v43 = vmul.f32 %v1481_v54, %v1453_v20  ;;  %v1484_v44 = vmul.f32 %v1931_v30, %v1467_v27  ;;  %vm1489_vm14 = vweird.f32 %v1931_v30 }
 0xfef   :  { %vm1490_vm1 = vmor %vm1488_vm15, %vm1489_vm14 }
 0xff0   :  { %1533 = vmatmul.f32.vlgmr.msrb.gmra.mxu2 %v1498_v43  ;;  %v1485_v45 = vsub.f32 1.0, %v1484_v44 }
 0xff2   :  { %v1486_v57 = vmul.f32 %v1931_v30, %v1485_v45 }
 0xff4   :  { %v1487_v48 = vadd.f32 %v1931_v30, %v1486_v57 }
 0xff6   :  { %v1491_v18 = vsel %vm1490_vm1, %v1931_v30, %v1487_v48 }
 0xff7   :  { %v1496_v50 = vsel %vm1493_vm2, %v1495_v49, %v1491_v18 }
 0xff8   :  { %v1499_v53 = vmul.f32 %v1496_v50, %v1456_v26 }
 0xffa   :  { %1536 = vmatmul.f32.gmra.mxu2 %v1499_v53 }
0x1073   :  { %v1534_v52 = vpop.f32.mrf.mxu2 }
0x1074   :  { %v1540_v56 = vadd.f32 %v1534_v52, %v2513_v16 }
0x1076   :  { %v1544_v58 = vadd.f32 %v1831_v55, %v1540_v56 }
0x1078   :  { %v1548_v51 = vsel %vm53_vm0, %v1544_v58, 0.0 }
0x1079   :  { %1549 = vadd.xlane.f32.xlu1 %v1548_v51 }
0x107d   :  { %v1537_v22 = vpop.f32.mrf.mxu2 }
0x107e   :  { %v1541_v59 = vadd.f32 %v1537_v22, %v2518_v17 }
0x1080   :  { %v1545_v61 = vadd.f32 %v1831_v55, %v1541_v59 }
0x1082   :  { %v1551_v3 = vsel %vm53_vm0, %v1545_v61, 0.0 }
0x1083   :  { %1552 = vadd.xlane.f32.xlu2 %v1551_v3 }
0x10ec   :  { %v1550_v63 = vpop.xlane.xlu1 %1549 }
0x10ed   :  { %v1554_v60 = vmul.f32 %v1550_v63, %v2073_v14 }
0x10ef   :  { %v1556_v0 = vsub.f32 %v1544_v58, %v1554_v60 }
0x10f1   :  { %v1558_v1 = vmul.f32 %v1556_v0, %v1556_v0 }
0x10f3   :  { %v1560_v6 = vsel %vm53_vm0, %v1558_v1, 0.0 }
0x10f4   :  { %1561 = vadd.xlane.f32.xlu0 %v1560_v6 }
0x10f6   :  { %v1553_v16 = vpop.xlane.xlu2 %1552 }
0x10f7   :  { %v1555_v4 = vmul.f32 %v1553_v16, %v2073_v14 }
0x10f9   :  { %v1557_v5 = vsub.f32 %v1545_v61, %v1555_v4 }
0x10fb   :  { %v1559_v7 = vmul.f32 %v1557_v5, %v1557_v5 }
0x10fd   :  { %v1563_v8 = vsel %vm53_vm0, %v1559_v7, 0.0 }
0x10fe   :  { %1564 = vadd.xlane.f32.xlu1 %v1563_v8 }
0x1167   :  { %v1562_v17 = vpop.xlane.xlu0 %1561 }
0x1168   :  { %v1566_v9 = vmul.f32 %v1562_v17, %v2073_v14 }
0x116a   :  { %v1568_v11 = vadd.f32 1e-05, %v1566_v9 }
0x116c   :  { %1932 = vrsqrt.f32 %v1568_v11  ;;  %vm1576_vm8 = vweird.f32 %v1568_v11 }
0x1171   :  { %v1565_v13 = vpop.xlane.xlu1 %1564 }
0x1172   :  { %v1933_v15 = vpop.eup %1932  ;;  %v1567_v19 = vmul.f32 %v1565_v13, %v2073_v14  ;;  %v1832_v14 = vld [vmem:[%s2641_s3 + $0xc] ss:$0 sm:$0xff]  ;;  %s1658_s3 = scalar_lea.vmem [#allocation2], %s1754_s16 }
0x1173   :  { %v1571_v20 = vmul.f32 %v1933_v15, %v1568_v11  ;;  %vm1577_vm3 = vweird.f32 %v1933_v15 }
0x1174   :  { %v1569_v21 = vadd.f32 1e-05, %v1567_v19  ;;  %vm1578_vm9 = vmor %vm1576_vm8, %vm1577_vm3 }
0x1175   :  { %v1572_v23 = vmul.f32 %v1933_v15, %v1571_v20 }
0x1176   :  { %1934 = vrsqrt.f32 %v1569_v21  ;;  %vm1586_vm4 = vweird.f32 %v1569_v21 }
0x1177   :  { %v1573_v24 = vmul.f32 0.5, %v1572_v23 }
0x1179   :  { %v1574_v36 = vsub.f32 1.5, %v1573_v24 }
0x117b   :  { %v1575_v26 = vmul.f32 %v1933_v15, %v1574_v36 }
0x117c   :  { %v1935_v28 = vpop.eup %1934 }
0x117d   :  { %v1579_v25 = vsel %vm1578_vm9, %v1933_v15, %v1575_v26  ;;  %v1581_v29 = vmul.f32 %v1935_v28, %v1569_v21  ;;  %vm1587_vm10 = vweird.f32 %v1935_v28 }
0x117e   :  { %v1590_v31 = vmul.f32 %v1579_v25, %v1556_v0  ;;  %vm1588_vm5 = vmor %vm1586_vm4, %vm1587_vm10 }
0x117f   :  { %v1582_v32 = vmul.f32 %v1935_v28, %v1581_v29 }
0x1180   :  { %v1593_v2 = vmul.f32 %v1832_v14, %v1590_v31 }
0x1181   :  { %v1583_v27 = vmul.f32 0.5, %v1582_v32 }
0x1182   :  { %v1596_v35 = vadd.f32 %v1833_v40, %v1593_v2 }
0x1183   :  { %v1584_v37 = vsub.f32 1.5, %v1583_v27 }
0x1184   :  { %1598 = vst.msk [vmem:[#allocation2] sm:$0xff] %vm53_vm0, %v1596_v35 }
0x1185   :  { %v1585_v38 = vmul.f32 %v1935_v28, %v1584_v37 }
0x1187   :  { %v1589_v39 = vsel %vm1588_vm5, %v1935_v28, %v1585_v38 }
0x1188   :  { %v1591_v41 = vmul.f32 %v1589_v39, %v1557_v5 }
0x118a   :  { %v1594_v62 = vmul.f32 %v1832_v14, %v1591_v41 }
0x118c   :  { %v1597_v42 = vadd.f32 %v1833_v40, %v1594_v62 }
0x118e   :  { %1599 = vst.msk [vmem:[#allocation2 + $0x8] sm:$0xff] %vm53_vm0, %v1597_v42 }
0x1195   :  { %v1755_v30 = vld [vmem:[%s1658_s3 + $0x8] sm:$0x1]  ;;  %v1602_v43 = vld [vmem:[%s1601_s1] sm:$0x1] }
0x1196   :  { %v1608_v54 = vrot.slane %v1755_v30, 7 }
0x1198   :  { %v1611_v44 = vsel %vm1610_vm6, %v1602_v43, %v1608_v54 }
0x1199   :  { %1756 = vmatmul.msk.f32.vlgmr.msra.gmra.mxu0 %vm53_vm0, %v1611_v44 }
0x1216   :  { %v1636_v45 = vpop.f32.mrf.mxu0 }
0x1217   :  { %1640 = vst.msk [vmem:[#allocation5] sm:$0x3] %vm1639_vm7, %v1636_v45 }
0x1218   :  { %1651 = dma.vmem_to_hbm [thread:$0]  %s1647_s11, 32, %s1649_s19, [#allocation6]  }
0x1219   :  { %1976 = dma.done.wait [#allocation6], 32  }
0x121a   :  { %1977 = vsyncadd [#allocation6], 4294967264 }
0x121b   :  { %1656 = vsyncpa [#allocation6], 1 }

</bundles_post_ra>
